<compile_context>
chip_gen: v7x
topology: tpu7x:2x2x1
jax: 0.10.0
libtpu: 0.0.40
codegen_flags: <defaults>
</compile_context>

<pallas_src>
import jax
import jax.numpy as jnp
from jax.experimental import pallas as pl
from jax.experimental.pallas import tpu as pltpu

INPUT_SIZE = 5
HIDDEN = 100
OUTPUT = 1

HP = 128                  # hidden padded to one full 128-lane block
GATE_W = 4 * HP           # 512 lanes of gate pre-activations
INPUT_PAD = 8             # sublane-aligned padded input feature dim
OUT_PAD = 128             # lane-dense output slab (column 0 is the prediction)

# PyTorch gate row order is (i, f, g, o); we repack blocks as (i, f, o, g).
_GATE_ORDER = (0, 1, 3, 2)


def lstm_kernel(x_ref, wih_ref, whh_ref, b_ref, wlin_ref, blin_ref,
                out_ref, gx_scr):
    T = x_ref.shape[0]

    # Hoisted input projection + bias for all timesteps: one (T, 4*HP) matmul.
    gx_scr[...] = (
        jnp.dot(x_ref[...], wih_ref[...], preferred_element_type=jnp.float32)
        + b_ref[...]
    )

    h0 = jnp.zeros((1, HP), jnp.float32)
    c0 = jnp.zeros((1, HP), jnp.float32)

    def step(t, carry):
        h, c = carry
        gates = gx_scr[pl.ds(t, 1), :] + jnp.dot(
            h, whh_ref[...], preferred_element_type=jnp.float32)
        # (i, f, o) share one 384-lane sigmoid; g is the last 128-lane block.
        s = jax.nn.sigmoid(gates[:, 0:3 * HP])
        g = jnp.tanh(gates[:, 3 * HP:4 * HP])
        i = s[:, 0 * HP:1 * HP]
        f = s[:, 1 * HP:2 * HP]
        o = s[:, 2 * HP:3 * HP]
        c_new = f * c + i * g
        h_new = o * jnp.tanh(c_new)
        return (h_new, c_new)

    h, _ = jax.lax.fori_loop(0, T, step, (h0, c0), unroll=True)

    # Linear head on the last hidden state, written as a lane-dense slab.
    out_ref[...] = (
        jnp.dot(h, wlin_ref[...], preferred_element_type=jnp.float32)
        + blin_ref[...]
    )


def pack_params(w_ih, w_hh, b_ih, b_hh, w_lin, b_lin):
    """One-time weight prep (transpose, gate repack, pad). Not per-call."""
    H = HIDDEN

    def pack_gate_cols(w_t, rows_pad):
        # w_t: (in_dim, 4H) in PyTorch (i,f,g,o) column order ->
        # (rows_pad, 4*HP) in (i,f,o,g) 128-aligned block order, zero padded.
        in_dim = w_t.shape[0]
        out = jnp.zeros((rows_pad, GATE_W), jnp.float32)
        for k, src in enumerate(_GATE_ORDER):
            out = out.at[:in_dim, k * HP:k * HP + H].set(
                w_t[:, src * H:(src + 1) * H])
        return out

    wih_t = jnp.transpose(w_ih).astype(jnp.float32)   # (input, 4H)
    whh_t = jnp.transpose(w_hh).astype(jnp.float32)   # (H, 4H)
    b = (b_ih + b_hh).astype(jnp.float32)             # (4H,)

    wih_p = pack_gate_cols(wih_t, INPUT_PAD)          # (8, 512)
    whh_p = pack_gate_cols(whh_t, HP)                 # (128, 512)

    b_p = jnp.zeros((1, GATE_W), jnp.float32)
    for k, src in enumerate(_GATE_ORDER):
        b_p = b_p.at[0, k * HP:k * HP + H].set(b[src * H:(src + 1) * H])

    wlin_p = jnp.zeros((HP, OUT_PAD), jnp.float32).at[:H, :OUTPUT].set(
        jnp.transpose(w_lin).astype(jnp.float32))     # (128, 128)
    blin_p = jnp.zeros((1, OUT_PAD), jnp.float32).at[0, :OUTPUT].set(
        b_lin.astype(jnp.float32))                    # (1, 128)

    return wih_p, whh_p, b_p, wlin_p, blin_p


@jax.jit
def lstm_forward(x, wih_p, whh_p, b_p, wlin_p, blin_p):
    """x: (T, input_size) float32. Returns (output_size,) == predictions[-1]."""
    T = x.shape[0]
    x_p = jnp.zeros((T, INPUT_PAD), jnp.float32).at[:, :INPUT_SIZE].set(x)

    vmem = pl.BlockSpec(memory_space=pltpu.MemorySpace.VMEM)
    out = pl.pallas_call(
        lstm_kernel,
        out_shape=jax.ShapeDtypeStruct((1, OUT_PAD), jnp.float32),
        in_specs=[vmem] * 6,
        out_specs=vmem,
        scratch_shapes=[
            pltpu.VMEM((T, GATE_W), jnp.float32),   # hoisted x-projection
        ],
    )(x_p, wih_p, whh_p, b_p, wlin_p, blin_p)
    return out[0, :OUTPUT]


def reference_forward(x, w_ih, w_hh, b_ih, b_hh, w_lin, b_lin):
    """Pure-JAX reference matching torch.nn.LSTM semantics."""
    H = HIDDEN
    h = jnp.zeros((H,), jnp.float32)
    c = jnp.zeros((H,), jnp.float32)

    def step(carry, x_t):
        h, c = carry
        gates = w_ih @ x_t + b_ih + w_hh @ h + b_hh
        i = jax.nn.sigmoid(gates[0 * H:1 * H])
        f = jax.nn.sigmoid(gates[1 * H:2 * H])
        g = jnp.tanh(gates[2 * H:3 * H])
        o = jax.nn.sigmoid(gates[3 * H:4 * H])
        c = f * c + i * g
        h = o * jnp.tanh(c)
        return (h, c), h

    (h, c), _ = jax.lax.scan(step, (h, c), x)
    return w_lin @ h + b_lin


if __name__ == "__main__":
    key = jax.random.PRNGKey(0)
    T = 8  # sequence length
    ks = jax.random.split(key, 8)
    bound = 1.0 / jnp.sqrt(HIDDEN)

    # Deterministic parameter init (uniform, like PyTorch's default).
    w_ih = jax.random.uniform(ks[0], (4 * HIDDEN, INPUT_SIZE), jnp.float32,
                              -bound, bound)
    w_hh = jax.random.uniform(ks[1], (4 * HIDDEN, HIDDEN), jnp.float32,
                              -bound, bound)
    b_ih = jax.random.uniform(ks[2], (4 * HIDDEN,), jnp.float32, -bound, bound)
    b_hh = jax.random.uniform(ks[3], (4 * HIDDEN,), jnp.float32, -bound, bound)
    w_lin = jax.random.uniform(ks[4], (OUTPUT, HIDDEN), jnp.float32,
                               -bound, bound)
    b_lin = jax.random.uniform(ks[5], (OUTPUT,), jnp.float32, -bound, bound)

    x = jax.random.normal(ks[6], (T, INPUT_SIZE), jnp.float32)

    packed = pack_params(w_ih, w_hh, b_ih, b_hh, w_lin, b_lin)
    packed = jax.tree_util.tree_map(jax.block_until_ready, packed)

    out = lstm_forward(x, *packed)
    jax.block_until_ready(out)

    ref = reference_forward(x, w_ih, w_hh, b_ih, b_hh, w_lin, b_lin)
    assert out.shape == (OUTPUT,)
    assert jnp.allclose(out, ref, atol=1e-5, rtol=1e-5), (out, ref)

    print("KERNEL_OK")
</pallas_src>

<mosaic_0001>
module attributes {stable_mosaic.version = 11 : i64} {
  func.func @lstm_kernel(%arg0: memref<8x8xf32, #tpu.memory_space<vmem>>, %arg1: memref<8x512xf32, #tpu.memory_space<vmem>>, %arg2: memref<128x512xf32, #tpu.memory_space<vmem>>, %arg3: memref<1x512xf32, #tpu.memory_space<vmem>>, %arg4: memref<128x128xf32, #tpu.memory_space<vmem>>, %arg5: memref<1x128xf32, #tpu.memory_space<vmem>>, %arg6: memref<1x128xf32, #tpu.memory_space<vmem>>, %arg7: memref<8x512xf32, #tpu.memory_space<vmem>>) attributes {dimension_semantics = [], scalar_prefetch = 0 : i64, scratch_operands = 1 : i64, tpu.core_type = #tpu.core_type<tc>} {
    %c0 = arith.constant 0 : index
    %c0_0 = arith.constant 0 : index
    %0 = vector.load %arg0[%c0, %c0_0] : memref<8x8xf32, #tpu.memory_space<vmem>>, vector<8x8xf32>
    %c0_1 = arith.constant 0 : index
    %c0_2 = arith.constant 0 : index
    %1 = vector.load %arg1[%c0_1, %c0_2] : memref<8x512xf32, #tpu.memory_space<vmem>>, vector<8x512xf32>
    %cst = arith.constant dense<0.000000e+00> : vector<8x512xf32>
    %2 = tpu.matmul %0, %1, %cst {dimension_numbers = #tpu.dot_dimension_numbers<[1], [0], [0], [1], [0, 0, 1, 1], [], []>} : vector<8x8xf32>, vector<8x512xf32>, vector<8x512xf32> -> vector<8x512xf32>
    %c0_3 = arith.constant 0 : index
    %c0_4 = arith.constant 0 : index
    %3 = vector.load %arg3[%c0_3, %c0_4] : memref<1x512xf32, #tpu.memory_space<vmem>>, vector<1x512xf32>
    %4 = vector.broadcast %3 : vector<1x512xf32> to vector<8x512xf32>
    %5 = arith.addf %2, %4 : vector<8x512xf32>
    %c0_5 = arith.constant 0 : index
    %c0_6 = arith.constant 0 : index
    %6 = vector.load %arg7[%c0_5, %c0_6] : memref<8x512xf32, #tpu.memory_space<vmem>>, vector<8x512xf32>
    tpu.vector_store %arg7[%c0_5, %c0_6], %5 {strides = array<i32>} : memref<8x512xf32, #tpu.memory_space<vmem>>, vector<8x512xf32>,
    %cst_7 = arith.constant 0.000000e+00 : f32
    %7 = vector.broadcast %cst_7 : f32 to vector<1x128xf32>
    %cst_8 = arith.constant 0.000000e+00 : f32
    %8 = vector.broadcast %cst_8 : f32 to vector<1x128xf32>
    %c0_i32 = arith.constant 0 : i32
    %9 = arith.index_cast %c0_i32 : i32 to index
    %c0_9 = arith.constant 0 : index
    %10 = vector.load %arg7[%9, %c0_9] : memref<8x512xf32, #tpu.memory_space<vmem>>, vector<1x512xf32>
    %c0_10 = arith.constant 0 : index
    %c0_11 = arith.constant 0 : index
    %11 = vector.load %arg2[%c0_10, %c0_11] : memref<128x512xf32, #tpu.memory_space<vmem>>, vector<128x512xf32>
    %cst_12 = arith.constant dense<0.000000e+00> : vector<1x512xf32>
    %12 = tpu.matmul %7, %11, %cst_12 {dimension_numbers = #tpu.dot_dimension_numbers<[1], [0], [0], [1], [0, 0, 1, 1], [], []>} : vector<1x128xf32>, vector<128x512xf32>, vector<1x512xf32> -> vector<1x512xf32>
    %13 = arith.addf %10, %12 : vector<1x512xf32>
    %14 = vector.extract_strided_slice %13 {offsets = [0, 0], sizes = [1, 384], strides = [1, 1]} : vector<1x512xf32> to vector<1x384xf32>
    %15 = arith.negf %14 : vector<1x384xf32>
    %16 = math.exp %15 : vector<1x384xf32>
    %cst_13 = arith.constant 1.000000e+00 : f32
    %17 = vector.broadcast %cst_13 : f32 to vector<1x384xf32>
    %18 = arith.addf %17, %16 : vector<1x384xf32>
    %19 = arith.divf %17, %18 : vector<1x384xf32>
    %20 = vector.extract_strided_slice %13 {offsets = [0, 384], sizes = [1, 128], strides = [1, 1]} : vector<1x512xf32> to vector<1x128xf32>
    %21 = math.tanh %20 : vector<1x128xf32>
    %22 = vector.extract_strided_slice %19 {offsets = [0, 0], sizes = [1, 128], strides = [1, 1]} : vector<1x384xf32> to vector<1x128xf32>
    %23 = vector.extract_strided_slice %19 {offsets = [0, 128], sizes = [1, 128], strides = [1, 1]} : vector<1x384xf32> to vector<1x128xf32>
    %24 = vector.extract_strided_slice %19 {offsets = [0, 256], sizes = [1, 128], strides = [1, 1]} : vector<1x384xf32> to vector<1x128xf32>
    %25 = arith.mulf %23, %8 : vector<1x128xf32>
    %26 = arith.mulf %22, %21 : vector<1x128xf32>
    %27 = arith.addf %25, %26 : vector<1x128xf32>
    %28 = math.tanh %27 : vector<1x128xf32>
    %29 = arith.mulf %24, %28 : vector<1x128xf32>
    %c1_i32 = arith.constant 1 : i32
    %30 = arith.index_cast %c1_i32 : i32 to index
    %c0_14 = arith.constant 0 : index
    %31 = vector.load %arg7[%30, %c0_14] : memref<8x512xf32, #tpu.memory_space<vmem>>, vector<1x512xf32>
    %c0_15 = arith.constant 0 : index
    %c0_16 = arith.constant 0 : index
    %32 = vector.load %arg2[%c0_15, %c0_16] : memref<128x512xf32, #tpu.memory_space<vmem>>, vector<128x512xf32>
    %cst_17 = arith.constant dense<0.000000e+00> : vector<1x512xf32>
    %33 = tpu.matmul %29, %32, %cst_17 {dimension_numbers = #tpu.dot_dimension_numbers<[1], [0], [0], [1], [0, 0, 1, 1], [], []>} : vector<1x128xf32>, vector<128x512xf32>, vector<1x512xf32> -> vector<1x512xf32>
    %34 = arith.addf %31, %33 : vector<1x512xf32>
    %35 = vector.extract_strided_slice %34 {offsets = [0, 0], sizes = [1, 384], strides = [1, 1]} : vector<1x512xf32> to vector<1x384xf32>
    %36 = arith.negf %35 : vector<1x384xf32>
    %37 = math.exp %36 : vector<1x384xf32>
    %cst_18 = arith.constant 1.000000e+00 : f32
    %38 = vector.broadcast %cst_18 : f32 to vector<1x384xf32>
    %39 = arith.addf %38, %37 : vector<1x384xf32>
    %40 = arith.divf %38, %39 : vector<1x384xf32>
    %41 = vector.extract_strided_slice %34 {offsets = [0, 384], sizes = [1, 128], strides = [1, 1]} : vector<1x512xf32> to vector<1x128xf32>
    %42 = math.tanh %41 : vector<1x128xf32>
    %43 = vector.extract_strided_slice %40 {offsets = [0, 0], sizes = [1, 128], strides = [1, 1]} : vector<1x384xf32> to vector<1x128xf32>
    %44 = vector.extract_strided_slice %40 {offsets = [0, 128], sizes = [1, 128], strides = [1, 1]} : vector<1x384xf32> to vector<1x128xf32>
    %45 = vector.extract_strided_slice %40 {offsets = [0, 256], sizes = [1, 128], strides = [1, 1]} : vector<1x384xf32> to vector<1x128xf32>
    %46 = arith.mulf %44, %27 : vector<1x128xf32>
    %47 = arith.mulf %43, %42 : vector<1x128xf32>
    %48 = arith.addf %46, %47 : vector<1x128xf32>
    %49 = math.tanh %48 : vector<1x128xf32>
    %50 = arith.mulf %45, %49 : vector<1x128xf32>
    %c2_i32 = arith.constant 2 : i32
    %51 = arith.index_cast %c2_i32 : i32 to index
    %c0_19 = arith.constant 0 : index
    %52 = vector.load %arg7[%51, %c0_19] : memref<8x512xf32, #tpu.memory_space<vmem>>, vector<1x512xf32>
    %c0_20 = arith.constant 0 : index
    %c0_21 = arith.constant 0 : index
    %53 = vector.load %arg2[%c0_20, %c0_21] : memref<128x512xf32, #tpu.memory_space<vmem>>, vector<128x512xf32>
    %cst_22 = arith.constant dense<0.000000e+00> : vector<1x512xf32>
    %54 = tpu.matmul %50, %53, %cst_22 {dimension_numbers = #tpu.dot_dimension_numbers<[1], [0], [0], [1], [0, 0, 1, 1], [], []>} : vector<1x128xf32>, vector<128x512xf32>, vector<1x512xf32> -> vector<1x512xf32>
    %55 = arith.addf %52, %54 : vector<1x512xf32>
    %56 = vector.extract_strided_slice %55 {offsets = [0, 0], sizes = [1, 384], strides = [1, 1]} : vector<1x512xf32> to vector<1x384xf32>
    %57 = arith.negf %56 : vector<1x384xf32>
    %58 = math.exp %57 : vector<1x384xf32>
    %cst_23 = arith.constant 1.000000e+00 : f32
    %59 = vector.broadcast %cst_23 : f32 to vector<1x384xf32>
    %60 = arith.addf %59, %58 : vector<1x384xf32>
    %61 = arith.divf %59, %60 : vector<1x384xf32>
    %62 = vector.extract_strided_slice %55 {offsets = [0, 384], sizes = [1, 128], strides = [1, 1]} : vector<1x512xf32> to vector<1x128xf32>
    %63 = math.tanh %62 : vector<1x128xf32>
    %64 = vector.extract_strided_slice %61 {offsets = [0, 0], sizes = [1, 128], strides = [1, 1]} : vector<1x384xf32> to vector<1x128xf32>
    %65 = vector.extract_strided_slice %61 {offsets = [0, 128], sizes = [1, 128], strides = [1, 1]} : vector<1x384xf32> to vector<1x128xf32>
    %66 = vector.extract_strided_slice %61 {offsets = [0, 256], sizes = [1, 128], strides = [1, 1]} : vector<1x384xf32> to vector<1x128xf32>
    %67 = arith.mulf %65, %48 : vector<1x128xf32>
    %68 = arith.mulf %64, %63 : vector<1x128xf32>
    %69 = arith.addf %67, %68 : vector<1x128xf32>
    %70 = math.tanh %69 : vector<1x128xf32>
    %71 = arith.mulf %66, %70 : vector<1x128xf32>
    %c3_i32 = arith.constant 3 : i32
    %72 = arith.index_cast %c3_i32 : i32 to index
    %c0_24 = arith.constant 0 : index
    %73 = vector.load %arg7[%72, %c0_24] : memref<8x512xf32, #tpu.memory_space<vmem>>, vector<1x512xf32>
    %c0_25 = arith.constant 0 : index
    %c0_26 = arith.constant 0 : index
    %74 = vector.load %arg2[%c0_25, %c0_26] : memref<128x512xf32, #tpu.memory_space<vmem>>, vector<128x512xf32>
    %cst_27 = arith.constant dense<0.000000e+00> : vector<1x512xf32>
    %75 = tpu.matmul %71, %74, %cst_27 {dimension_numbers = #tpu.dot_dimension_numbers<[1], [0], [0], [1], [0, 0, 1, 1], [], []>} : vector<1x128xf32>, vector<128x512xf32>, vector<1x512xf32> -> vector<1x512xf32>
    %76 = arith.addf %73, %75 : vector<1x512xf32>
    %77 = vector.extract_strided_slice %76 {offsets = [0, 0], sizes = [1, 384], strides = [1, 1]} : vector<1x512xf32> to vector<1x384xf32>
    %78 = arith.negf %77 : vector<1x384xf32>
    %79 = math.exp %78 : vector<1x384xf32>
    %cst_28 = arith.constant 1.000000e+00 : f32
    %80 = vector.broadcast %cst_28 : f32 to vector<1x384xf32>
    %81 = arith.addf %80, %79 : vector<1x384xf32>
    %82 = arith.divf %80, %81 : vector<1x384xf32>
    %83 = vector.extract_strided_slice %76 {offsets = [0, 384], sizes = [1, 128], strides = [1, 1]} : vector<1x512xf32> to vector<1x128xf32>
    %84 = math.tanh %83 : vector<1x128xf32>
    %85 = vector.extract_strided_slice %82 {offsets = [0, 0], sizes = [1, 128], strides = [1, 1]} : vector<1x384xf32> to vector<1x128xf32>
    %86 = vector.extract_strided_slice %82 {offsets = [0, 128], sizes = [1, 128], strides = [1, 1]} : vector<1x384xf32> to vector<1x128xf32>
    %87 = vector.extract_strided_slice %82 {offsets = [0, 256], sizes = [1, 128], strides = [1, 1]} : vector<1x384xf32> to vector<1x128xf32>
    %88 = arith.mulf %86, %69 : vector<1x128xf32>
    %89 = arith.mulf %85, %84 : vector<1x128xf32>
    %90 = arith.addf %88, %89 : vector<1x128xf32>
    %91 = math.tanh %90 : vector<1x128xf32>
    %92 = arith.mulf %87, %91 : vector<1x128xf32>
    %c4_i32 = arith.constant 4 : i32
    %93 = arith.index_cast %c4_i32 : i32 to index
    %c0_29 = arith.constant 0 : index
    %94 = vector.load %arg7[%93, %c0_29] : memref<8x512xf32, #tpu.memory_space<vmem>>, vector<1x512xf32>
    %c0_30 = arith.constant 0 : index
    %c0_31 = arith.constant 0 : index
    %95 = vector.load %arg2[%c0_30, %c0_31] : memref<128x512xf32, #tpu.memory_space<vmem>>, vector<128x512xf32>
    %cst_32 = arith.constant dense<0.000000e+00> : vector<1x512xf32>
    %96 = tpu.matmul %92, %95, %cst_32 {dimension_numbers = #tpu.dot_dimension_numbers<[1], [0], [0], [1], [0, 0, 1, 1], [], []>} : vector<1x128xf32>, vector<128x512xf32>, vector<1x512xf32> -> vector<1x512xf32>
    %97 = arith.addf %94, %96 : vector<1x512xf32>
    %98 = vector.extract_strided_slice %97 {offsets = [0, 0], sizes = [1, 384], strides = [1, 1]} : vector<1x512xf32> to vector<1x384xf32>
    %99 = arith.negf %98 : vector<1x384xf32>
    %100 = math.exp %99 : vector<1x384xf32>
    %cst_33 = arith.constant 1.000000e+00 : f32
    %101 = vector.broadcast %cst_33 : f32 to vector<1x384xf32>
    %102 = arith.addf %101, %100 : vector<1x384xf32>
    %103 = arith.divf %101, %102 : vector<1x384xf32>
    %104 = vector.extract_strided_slice %97 {offsets = [0, 384], sizes = [1, 128], strides = [1, 1]} : vector<1x512xf32> to vector<1x128xf32>
    %105 = math.tanh %104 : vector<1x128xf32>
    %106 = vector.extract_strided_slice %103 {offsets = [0, 0], sizes = [1, 128], strides = [1, 1]} : vector<1x384xf32> to vector<1x128xf32>
    %107 = vector.extract_strided_slice %103 {offsets = [0, 128], sizes = [1, 128], strides = [1, 1]} : vector<1x384xf32> to vector<1x128xf32>
    %108 = vector.extract_strided_slice %103 {offsets = [0, 256], sizes = [1, 128], strides = [1, 1]} : vector<1x384xf32> to vector<1x128xf32>
    %109 = arith.mulf %107, %90 : vector<1x128xf32>
    %110 = arith.mulf %106, %105 : vector<1x128xf32>
    %111 = arith.addf %109, %110 : vector<1x128xf32>
    %112 = math.tanh %111 : vector<1x128xf32>
    %113 = arith.mulf %108, %112 : vector<1x128xf32>
    %c5_i32 = arith.constant 5 : i32
    %114 = arith.index_cast %c5_i32 : i32 to index
    %c0_34 = arith.constant 0 : index
    %115 = vector.load %arg7[%114, %c0_34] : memref<8x512xf32, #tpu.memory_space<vmem>>, vector<1x512xf32>
    %c0_35 = arith.constant 0 : index
    %c0_36 = arith.constant 0 : index
    %116 = vector.load %arg2[%c0_35, %c0_36] : memref<128x512xf32, #tpu.memory_space<vmem>>, vector<128x512xf32>
    %cst_37 = arith.constant dense<0.000000e+00> : vector<1x512xf32>
    %117 = tpu.matmul %113, %116, %cst_37 {dimension_numbers = #tpu.dot_dimension_numbers<[1], [0], [0], [1], [0, 0, 1, 1], [], []>} : vector<1x128xf32>, vector<128x512xf32>, vector<1x512xf32> -> vector<1x512xf32>
    %118 = arith.addf %115, %117 : vector<1x512xf32>
    %119 = vector.extract_strided_slice %118 {offsets = [0, 0], sizes = [1, 384], strides = [1, 1]} : vector<1x512xf32> to vector<1x384xf32>
    %120 = arith.negf %119 : vector<1x384xf32>
    %121 = math.exp %120 : vector<1x384xf32>
    %cst_38 = arith.constant 1.000000e+00 : f32
    %122 = vector.broadcast %cst_38 : f32 to vector<1x384xf32>
    %123 = arith.addf %122, %121 : vector<1x384xf32>
    %124 = arith.divf %122, %123 : vector<1x384xf32>
    %125 = vector.extract_strided_slice %118 {offsets = [0, 384], sizes = [1, 128], strides = [1, 1]} : vector<1x512xf32> to vector<1x128xf32>
    %126 = math.tanh %125 : vector<1x128xf32>
    %127 = vector.extract_strided_slice %124 {offsets = [0, 0], sizes = [1, 128], strides = [1, 1]} : vector<1x384xf32> to vector<1x128xf32>
    %128 = vector.extract_strided_slice %124 {offsets = [0, 128], sizes = [1, 128], strides = [1, 1]} : vector<1x384xf32> to vector<1x128xf32>
    %129 = vector.extract_strided_slice %124 {offsets = [0, 256], sizes = [1, 128], strides = [1, 1]} : vector<1x384xf32> to vector<1x128xf32>
    %130 = arith.mulf %128, %111 : vector<1x128xf32>
    %131 = arith.mulf %127, %126 : vector<1x128xf32>
    %132 = arith.addf %130, %131 : vector<1x128xf32>
    %133 = math.tanh %132 : vector<1x128xf32>
    %134 = arith.mulf %129, %133 : vector<1x128xf32>
    %c6_i32 = arith.constant 6 : i32
    %135 = arith.index_cast %c6_i32 : i32 to index
    %c0_39 = arith.constant 0 : index
    %136 = vector.load %arg7[%135, %c0_39] : memref<8x512xf32, #tpu.memory_space<vmem>>, vector<1x512xf32>
    %c0_40 = arith.constant 0 : index
    %c0_41 = arith.constant 0 : index
    %137 = vector.load %arg2[%c0_40, %c0_41] : memref<128x512xf32, #tpu.memory_space<vmem>>, vector<128x512xf32>
    %cst_42 = arith.constant dense<0.000000e+00> : vector<1x512xf32>
    %138 = tpu.matmul %134, %137, %cst_42 {dimension_numbers = #tpu.dot_dimension_numbers<[1], [0], [0], [1], [0, 0, 1, 1], [], []>} : vector<1x128xf32>, vector<128x512xf32>, vector<1x512xf32> -> vector<1x512xf32>
    %139 = arith.addf %136, %138 : vector<1x512xf32>
    %140 = vector.extract_strided_slice %139 {offsets = [0, 0], sizes = [1, 384], strides = [1, 1]} : vector<1x512xf32> to vector<1x384xf32>
    %141 = arith.negf %140 : vector<1x384xf32>
    %142 = math.exp %141 : vector<1x384xf32>
    %cst_43 = arith.constant 1.000000e+00 : f32
    %143 = vector.broadcast %cst_43 : f32 to vector<1x384xf32>
    %144 = arith.addf %143, %142 : vector<1x384xf32>
    %145 = arith.divf %143, %144 : vector<1x384xf32>
    %146 = vector.extract_strided_slice %139 {offsets = [0, 384], sizes = [1, 128], strides = [1, 1]} : vector<1x512xf32> to vector<1x128xf32>
    %147 = math.tanh %146 : vector<1x128xf32>
    %148 = vector.extract_strided_slice %145 {offsets = [0, 0], sizes = [1, 128], strides = [1, 1]} : vector<1x384xf32> to vector<1x128xf32>
    %149 = vector.extract_strided_slice %145 {offsets = [0, 128], sizes = [1, 128], strides = [1, 1]} : vector<1x384xf32> to vector<1x128xf32>
    %150 = vector.extract_strided_slice %145 {offsets = [0, 256], sizes = [1, 128], strides = [1, 1]} : vector<1x384xf32> to vector<1x128xf32>
    %151 = arith.mulf %149, %132 : vector<1x128xf32>
    %152 = arith.mulf %148, %147 : vector<1x128xf32>
    %153 = arith.addf %151, %152 : vector<1x128xf32>
    %154 = math.tanh %153 : vector<1x128xf32>
    %155 = arith.mulf %150, %154 : vector<1x128xf32>
    %c7_i32 = arith.constant 7 : i32
    %156 = arith.index_cast %c7_i32 : i32 to index
    %c0_44 = arith.constant 0 : index
    %157 = vector.load %arg7[%156, %c0_44] : memref<8x512xf32, #tpu.memory_space<vmem>>, vector<1x512xf32>
    %c0_45 = arith.constant 0 : index
    %c0_46 = arith.constant 0 : index
    %158 = vector.load %arg2[%c0_45, %c0_46] : memref<128x512xf32, #tpu.memory_space<vmem>>, vector<128x512xf32>
    %cst_47 = arith.constant dense<0.000000e+00> : vector<1x512xf32>
    %159 = tpu.matmul %155, %158, %cst_47 {dimension_numbers = #tpu.dot_dimension_numbers<[1], [0], [0], [1], [0, 0, 1, 1], [], []>} : vector<1x128xf32>, vector<128x512xf32>, vector<1x512xf32> -> vector<1x512xf32>
    %160 = arith.addf %157, %159 : vector<1x512xf32>
    %161 = vector.extract_strided_slice %160 {offsets = [0, 0], sizes = [1, 384], strides = [1, 1]} : vector<1x512xf32> to vector<1x384xf32>
    %162 = arith.negf %161 : vector<1x384xf32>
    %163 = math.exp %162 : vector<1x384xf32>
    %cst_48 = arith.constant 1.000000e+00 : f32
    %164 = vector.broadcast %cst_48 : f32 to vector<1x384xf32>
    %165 = arith.addf %164, %163 : vector<1x384xf32>
    %166 = arith.divf %164, %165 : vector<1x384xf32>
    %167 = vector.extract_strided_slice %160 {offsets = [0, 384], sizes = [1, 128], strides = [1, 1]} : vector<1x512xf32> to vector<1x128xf32>
    %168 = math.tanh %167 : vector<1x128xf32>
    %169 = vector.extract_strided_slice %166 {offsets = [0, 0], sizes = [1, 128], strides = [1, 1]} : vector<1x384xf32> to vector<1x128xf32>
    %170 = vector.extract_strided_slice %166 {offsets = [0, 128], sizes = [1, 128], strides = [1, 1]} : vector<1x384xf32> to vector<1x128xf32>
    %171 = vector.extract_strided_slice %166 {offsets = [0, 256], sizes = [1, 128], strides = [1, 1]} : vector<1x384xf32> to vector<1x128xf32>
    %172 = arith.mulf %170, %153 : vector<1x128xf32>
    %173 = arith.mulf %169, %168 : vector<1x128xf32>
    %174 = arith.addf %172, %173 : vector<1x128xf32>
    %175 = math.tanh %174 : vector<1x128xf32>
    %176 = arith.mulf %171, %175 : vector<1x128xf32>
    %c8_i32 = arith.constant 8 : i32
    %c0_49 = arith.constant 0 : index
    %c0_50 = arith.constant 0 : index
    %177 = vector.load %arg4[%c0_49, %c0_50] : memref<128x128xf32, #tpu.memory_space<vmem>>, vector<128x128xf32>
    %cst_51 = arith.constant dense<0.000000e+00> : vector<1x128xf32>
    %178 = tpu.matmul %176, %177, %cst_51 {dimension_numbers = #tpu.dot_dimension_numbers<[1], [0], [0], [1], [0, 0, 1, 1], [], []>} : vector<1x128xf32>, vector<128x128xf32>, vector<1x128xf32> -> vector<1x128xf32>
    %c0_52 = arith.constant 0 : index
    %c0_53 = arith.constant 0 : index
    %179 = vector.load %arg5[%c0_52, %c0_53] : memref<1x128xf32, #tpu.memory_space<vmem>>, vector<1x128xf32>
    %180 = arith.addf %178, %179 : vector<1x128xf32>
    %c0_54 = arith.constant 0 : index
    %c0_55 = arith.constant 0 : index
    %181 = vector.load %arg6[%c0_54, %c0_55] : memref<1x128xf32, #tpu.memory_space<vmem>>, vector<1x128xf32>
    tpu.vector_store %arg6[%c0_54, %c0_55], %180 {strides = array<i32>} : memref<1x128xf32, #tpu.memory_space<vmem>>, vector<1x128xf32>,
    return
  }
}

</mosaic_0001>

<bundles_post_ra>
// kernel: lstm_forward.1
= control target key start
LH: loop header
LB: loop body
LE: loop exit
PB: predicated region body
PF: predicated region fallthrough
CT: control target
= control target key end

     0   :  { %11 = vsyncpa [#allocation4], 0  ;;  %s3189_s0 = inlined_call_operand.vmem [shape: f32[8,8], index: 0, kind: input, shape index: {}]   ;;  %s3190_s1 = inlined_call_operand.vmem [shape: f32[8,512], index: 1, kind: input, shape index: {}]   ;;  %s3191_s2 = inlined_call_operand.hbm [shape: f32[128,512], index: 2, kind: input, shape index: {}]   ;;  %s3192_s3 = inlined_call_operand.vmem [shape: f32[1,512], index: 3, kind: input, shape index: {}]   ;;  %s3193_s4 = inlined_call_operand.hbm [shape: f32[128,128], index: 4, kind: input, shape index: {}]   ;;  %s3194_s5 = inlined_call_operand.vmem [shape: f32[1,128], index: 5, kind: input, shape index: {}]   ;;  %s3195_s6 = inlined_call_operand.hbm [shape: f32[1,128], index: 6, kind: output, shape index: {}]  }
   0x1   :  { %12 = vsyncpa [#allocation7], 0 }
   0x2   :  { %13 = vsyncpa [#allocation5], 0  ;;  %s2693_s21 = smov [#allocation3]   ;;  %s2621_s25 = scalar_lea.hbm %s3191_s2, 8192 }
   0x3   :  { %s23_s22 = sshll.u32 %s2693_s21, 4  ;;  %p2622_p0 = scmp.ne.s32.totalorder %s3191_s2, %s2621_s25  ;;  %s24_s22 = int_to_ptr.vmem [resolvable:$true] %s23_s22 }
   0x4   :  { %p2625_p1 = scmp.lt.u32.totalorder %s2621_s25, %s3191_s2 }
   0x6   :  { %p2627_p2 = pnand %p2625_p1, %p2622_p0 }
   0x8   :  { %2630 = shalt.err (!%p2627_p2)
}
   0x9   :  { %s2631_s30 = scalar_lea.vmem %s24_s22, 8192  ;;  %p2636_p4 = scmp.lt.s32.totalorder %s24_s22, %s24_s22 }
   0xa   :  { %p2632_p3 = scmp.ne.s32.totalorder %s24_s22, %s2631_s30  ;;  %p2637_p5 = scmp.lt.s32.totalorder %s2631_s30, %s2631_s30 }
   0xc   :  { %p2638_p6 = por %p2637_p5, %p2636_p4 }
   0xe   :  { %p2639_p7 = pnand %p2638_p6, %p2632_p3 }
  0x10   :  { %2642 = shalt.err (!%p2639_p7)
}
  0x11   :  { %s2694_s7 = smov 512   ;;  %s2695_s8 = smov 32  }
  0x12   :  { %29 = dma.hbm_to_vmem [thread:$0]  %s3191_s2, 8192, %s24_s22, [#allocation4], %s2694_s7, %s2694_s7, %s2695_s8  }
  0x13   :  { %s2696_s11 = smov [#allocation6]   ;;  %s2643_s15 = scalar_lea.hbm %s3193_s4, 2048 }
  0x14   :  { %s37_s12 = sshll.u32 %s2696_s11, 4  ;;  %p2644_p8 = scmp.ne.s32.totalorder %s3193_s4, %s2643_s15  ;;  %s38_s12 = int_to_ptr.vmem [resolvable:$true] %s37_s12 }
  0x15   :  { %p2647_p9 = scmp.lt.u32.totalorder %s2643_s15, %s3193_s4 }
  0x17   :  { %p2649_p10 = pnand %p2647_p9, %p2644_p8 }
  0x19   :  { %2652 = shalt.err (!%p2649_p10)
}
  0x1a   :  { %s2653_s20 = scalar_lea.vmem %s38_s12, 2048  ;;  %p2658_p12 = scmp.lt.s32.totalorder %s38_s12, %s38_s12 }
  0x1b   :  { %p2654_p11 = scmp.ne.s32.totalorder %s38_s12, %s2653_s20  ;;  %p2659_p13 = scmp.lt.s32.totalorder %s2653_s20, %s2653_s20 }
  0x1d   :  { %p2660_p0 = por %p2659_p13, %p2658_p12 }
  0x1f   :  { %p2661_p1 = pnand %p2660_p0, %p2654_p11 }
  0x21   :  { %2664 = shalt.err (!%p2661_p1)
}
  0x22   :  { %s2697_s2 = smov 128   ;;  %s2698_s21 = smov 8  }
  0x23   :  { %43 = dma.hbm_to_vmem [thread:$0]  %s3193_s4, 2048, %s38_s12, [#allocation7], %s2697_s2, %s2697_s2, %s2698_s21  }
  0x24   :  { %2687 = dma.done.wait [#allocation4], 8192  }
  0x25   :  { %2688 = vsyncadd [#allocation4], 4294959104 }
  0x26   :  { %2689 = dma.done.wait [#allocation7], 2048  }
  0x27   :  { %2690 = vsyncadd [#allocation7], 4294965248  ;;  %v2699_v0 = vmov 0.0   ;;  %v54_v1 = vld [vmem:[%s3190_s1 + $0x8] sm:$0xff]  ;;  %v53_v2 = vld [vmem:[%s3190_s1] sm:$0xff]  ;;  %vm79_vm0 = vcmask 64512  }
  0x28   :  { %147 = vmatprep.mubr.f32.mxu1 %v2699_v0  ;;  %358 = vmatprep.mubr.f32.mxu0 %v2699_v0  ;;  %v52_v3 = vld [vmem:[%s3189_s0] sm:$0xff]  ;;  %v56_v4 = vld [vmem:[%s3190_s1 + $0x18] sm:$0xff]  ;;  %v55_v5 = vld [vmem:[%s3190_s1 + $0x10] sm:$0xff]  ;;  %vm2702_vm1 = vmmov 0   ;;  %s2703_s10 = smov [#allocation8]  }
  0x29   :  { %83 = vmatprep.subr.mxu1 %v54_v1  ;;  %v231_v6 = vld [vmem:[#allocation3 + $0x8] sm:$0xff]  ;;  %v233_v8 = vld [vmem:[#allocation3 + $0x18] sm:$0xff]  ;;  %v230_v12 = vld [vmem:[#allocation3] sm:$0xff]  ;;  %s1938_s11 = sshll.u32 %s2703_s10, 4  ;;  %s1939_s11 = int_to_ptr.vmem [resolvable:$true] %s1938_s11 }
  0x2a   :  { %84 = vmatpush1.msra.mxu1 %v53_v2  ;;  %v235_v7 = vld [vmem:[#allocation3 + $0x28] sm:$0xff]  ;;  %v237_v9 = vld [vmem:[#allocation3 + $0x38] sm:$0xff]  ;;  %v234_v13 = vld [vmem:[#allocation3 + $0x20] sm:$0xff]  ;;  %s2665_s12 = scalar_lea.vmem %s1939_s11, 16  ;;  %s2669_s13 = scalar_lea.vmem %s1939_s11, 32 }
  0x2b   :  { %1948 = vmatmul.mubr.msk.f32.vlgmr.msra.gmra.mrb[0].mxu1 %vm79_vm0, %v52_v3  ;;  %154 = vmatprep.subr.mxu1 %v56_v4  ;;  %v2781_v10 = vpack.c.bf16 %v235_v7, %v231_v6  ;;  %v2783_v11 = vpack.c.bf16 %v237_v9, %v233_v8  ;;  %v232_v14 = vld [vmem:[#allocation3 + $0x10] sm:$0xff]  ;;  %v2786_v15 = vpack.c.bf16 %v234_v13, %v230_v12  ;;  %v239_v17 = vld [vmem:[#allocation3 + $0x48] sm:$0xff]  ;;  %v241_v21 = vld [vmem:[#allocation3 + $0x58] sm:$0xff]  ;;  %p2666_p2 = scmp.ne.s32.totalorder %s1939_s11, %s2665_s12  ;;  %p2670_p3 = scmp.lt.s32.totalorder %s1939_s11, %s1939_s11 }
  0x2c   :  { %155 = vmatpush1.msra.mxu1 %v55_v5  ;;  %218 = vmatprep.mubr.f32.mxu1 %v2699_v0  ;;  %v236_v16 = vld [vmem:[#allocation3 + $0x30] sm:$0xff]  ;;  %v243_v18 = vld [vmem:[#allocation3 + $0x68] sm:$0xff]  ;;  %v245_v22 = vld [vmem:[#allocation3 + $0x78] sm:$0xff]  ;;  %p2671_p4 = scmp.lt.s32.totalorder %s2669_s13, %s2665_s12 }
  0x2d   :  { %2011 = vmatprep.subr.bf16.mxu0 %v2781_v10  ;;  %2043 = vmatprep.subr.bf16.mxu1 %v2783_v11  ;;  %v2790_v19 = vpack.c.bf16 %v236_v16, %v232_v14  ;;  %v2792_v20 = vpack.c.bf16 %v243_v18, %v239_v17  ;;  %v238_v23 = vld [vmem:[#allocation3 + $0x40] sm:$0xff]  ;;  %v2795_v24 = vpack.c.bf16 %v245_v22, %v241_v21  ;;  %v240_v26 = vld [vmem:[#allocation3 + $0x50] sm:$0xff]  ;;  %v247_v29 = vld [vmem:[#allocation3 + $0x88] sm:$0xff] }
  0x2e   :  { %2013 = vmatpush1.bf16.msra.mxu0 %v2786_v15  ;;  %v242_v25 = vld [vmem:[#allocation3 + $0x60] sm:$0xff]  ;;  %v244_v27 = vld [vmem:[#allocation3 + $0x70] sm:$0xff]  ;;  %v251_v30 = vld [vmem:[#allocation3 + $0xa8] sm:$0xff]  ;;  %p2672_p5 = por %p2671_p4, %p2670_p3 }
  0x2f   :  { %1949 = vmatmul.mubr.msk.f32.vlgmr.msra.gmra.mrb[2].mxu1 %vm79_vm0, %v52_v3  ;;  %2015 = vmatprep.subr.bf16.mxu0 %v2792_v20  ;;  %v2799_v28 = vpack.c.bf16 %v242_v25, %v238_v23  ;;  %v249_v31 = vld [vmem:[#allocation3 + $0x98] sm:$0xff]  ;;  %v2802_v32 = vpack.c.bf16 %v244_v27, %v240_v26  ;;  %v2804_v33 = vpack.c.bf16 %v251_v30, %v247_v29  ;;  %v246_v35 = vld [vmem:[#allocation3 + $0x80] sm:$0xff]  ;;  %v248_v38 = vld [vmem:[#allocation3 + $0x90] sm:$0xff] }
  0x30   :  { %2045 = vmatpush1.bf16.msra.mxu1 %v2790_v19  ;;  %v253_v34 = vld [vmem:[#allocation3 + $0xb8] sm:$0xff]  ;;  %v250_v36 = vld [vmem:[#allocation3 + $0xa0] sm:$0xff]  ;;  %429 = vmatprep.mubr.f32.mxu1 %v2699_v0  ;;  %v252_v39 = vld [vmem:[#allocation3 + $0xb0] sm:$0xff]  ;;  %p2673_p6 = pnand %p2672_p5, %p2666_p2 }
  0x31   :  { %2047 = vmatprep.subr.bf16.mxu1 %v2795_v24  ;;  %v2808_v37 = vpack.c.bf16 %v253_v34, %v249_v31  ;;  %v255_v40 = vld [vmem:[#allocation3 + $0xc8] sm:$0xff]  ;;  %v2811_v41 = vpack.c.bf16 %v250_v36, %v246_v35  ;;  %v257_v43 = vld [vmem:[#allocation3 + $0xd8] sm:$0xff]  ;;  %v254_v46 = vld [vmem:[#allocation3 + $0xc0] sm:$0xff]  ;;  %v2817_v48 = vpack.c.bf16 %v252_v39, %v248_v38 }
  0x32   :  { %2017 = vmatpush1.bf16.msra.mxu0 %v2799_v28  ;;  %v259_v42 = vld [vmem:[#allocation3 + $0xe8] sm:$0xff]  ;;  %v261_v44 = vld [vmem:[#allocation3 + $0xf8] sm:$0xff]  ;;  %v258_v47 = vld [vmem:[#allocation3 + $0xe0] sm:$0xff] }
  0x33   :  { %2019 = vmatprep.subr.bf16.mxu0 %v2804_v33  ;;  %v2814_v45 = vpack.c.bf16 %v259_v42, %v255_v40  ;;  %v263_v49 = vld [vmem:[#allocation3 + $0x108] sm:$0xff]  ;;  %v2820_v51 = vpack.c.bf16 %v261_v44, %v257_v43  ;;  %v256_v52 = vld [vmem:[#allocation3 + $0xd0] sm:$0xff]  ;;  %v2823_v54 = vpack.c.bf16 %v258_v47, %v254_v46  ;;  %v265_v55 = vld [vmem:[#allocation3 + $0x118] sm:$0xff] }
  0x34   :  { %2049 = vmatpush1.bf16.msra.mxu1 %v2802_v32  ;;  %v267_v50 = vld [vmem:[#allocation3 + $0x128] sm:$0xff]  ;;  %v260_v53 = vld [vmem:[#allocation3 + $0xf0] sm:$0xff]  ;;  %v269_v56 = vld [vmem:[#allocation3 + $0x138] sm:$0xff] }
  0x35   :  { %2051 = vmatprep.subr.bf16.mxu1 %v2808_v37  ;;  %v2826_v57 = vpack.c.bf16 %v267_v50, %v263_v49  ;;  %v262_v58 = vld [vmem:[#allocation3 + $0x100] sm:$0xff]  ;;  %v2829_v60 = vpack.c.bf16 %v260_v53, %v256_v52  ;;  %v271_v61 = vld [vmem:[#allocation3 + $0x148] sm:$0xff]  ;;  %v2832_v63 = vpack.c.bf16 %v269_v56, %v265_v55  ;;  %v264_v1 = vld [vmem:[#allocation3 + $0x110] sm:$0xff]  ;;  %v59_v53 = vlaneseq }
  0x36   :  { %2021 = vmatpush1.bf16.msra.mxu0 %v2811_v41  ;;  %v266_v59 = vld [vmem:[#allocation3 + $0x120] sm:$0xff]  ;;  %v275_v62 = vld [vmem:[#allocation3 + $0x168] sm:$0xff]  ;;  %v268_v2 = vld [vmem:[#allocation3 + $0x130] sm:$0xff] }
  0x37   :  { %2023 = vmatprep.subr.bf16.mxu0 %v2814_v45  ;;  %v2835_v3 = vpack.c.bf16 %v266_v59, %v262_v58  ;;  %v273_v4 = vld [vmem:[#allocation3 + $0x158] sm:$0xff]  ;;  %v2838_v6 = vpack.c.bf16 %v275_v62, %v271_v61  ;;  %v270_v7 = vld [vmem:[#allocation3 + $0x140] sm:$0xff]  ;;  %v2841_v9 = vpack.c.bf16 %v268_v2, %v264_v1  ;;  %v279_v12 = vld [vmem:[#allocation3 + $0x188] sm:$0xff]  ;;  %v60_v55 = vshrl.u32 %v59_v53, 7 }
  0x38   :  { %2053 = vmatpush1.bf16.msra.mxu1 %v2817_v48  ;;  %v277_v5 = vld [vmem:[#allocation3 + $0x178] sm:$0xff]  ;;  %v274_v8 = vld [vmem:[#allocation3 + $0x160] sm:$0xff]  ;;  %v283_v13 = vld [vmem:[#allocation3 + $0x1a8] sm:$0xff] }
  0x39   :  { %2055 = vmatprep.subr.bf16.mxu1 %v2820_v51  ;;  %v2844_v14 = vpack.c.bf16 %v277_v5, %v273_v4  ;;  %v272_v16 = vld [vmem:[#allocation3 + $0x150] sm:$0xff]  ;;  %v2847_v18 = vpack.c.bf16 %v274_v8, %v270_v7  ;;  %v281_v21 = vld [vmem:[#allocation3 + $0x198] sm:$0xff]  ;;  %v2850_v23 = vpack.c.bf16 %v283_v13, %v279_v12  ;;  %v278_v25 = vld [vmem:[#allocation3 + $0x180] sm:$0xff]  ;;  %v61_v56 = vsub.s32 0, %v60_v55 }
  0x3a   :  { %2025 = vmatpush1.bf16.msra.mxu0 %v2823_v54  ;;  %v276_v17 = vld [vmem:[#allocation3 + $0x170] sm:$0xff]  ;;  %v285_v22 = vld [vmem:[#allocation3 + $0x1b8] sm:$0xff]  ;;  %v282_v26 = vld [vmem:[#allocation3 + $0x1a0] sm:$0xff]  ;;  %v65_v59 = vsub.s32 1, %v60_v55  ;;  %v69_v62 = vsub.s32 2, %v60_v55  ;;  %v73_v2 = vsub.s32 3, %v60_v55 }
  0x3b   :  { %2027 = vmatprep.subr.bf16.mxu0 %v2826_v57  ;;  %v2853_v27 = vpack.c.bf16 %v276_v17, %v272_v16  ;;  %v287_v29 = vld [vmem:[#allocation3 + $0x1c8] sm:$0xff]  ;;  %v2856_v31 = vpack.c.bf16 %v285_v22, %v281_v21  ;;  %v280_v34 = vld [vmem:[#allocation3 + $0x190] sm:$0xff]  ;;  %v2859_v36 = vpack.c.bf16 %v282_v26, %v278_v25  ;;  %v289_v38 = vld [vmem:[#allocation3 + $0x1d8] sm:$0xff]  ;;  %v2700_v25 = vmov 1966171168  }
  0x3c   :  { %2057 = vmatpush1.bf16.msra.mxu1 %v2829_v60  ;;  %v291_v30 = vld [vmem:[#allocation3 + $0x1e8] sm:$0xff]  ;;  %v284_v35 = vld [vmem:[#allocation3 + $0x1b0] sm:$0xff]  ;;  %v293_v39 = vld [vmem:[#allocation3 + $0x1f8] sm:$0xff]  ;;  %v443_v26 = vunpack.c.l.s4 %v2700_v25 }
  0x3d   :  { %2059 = vmatprep.subr.bf16.mxu1 %v2832_v63  ;;  %v2862_v40 = vpack.c.bf16 %v291_v30, %v287_v29  ;;  %v286_v42 = vld [vmem:[#allocation3 + $0x1c0] sm:$0xff]  ;;  %v2865_v44 = vpack.c.bf16 %v284_v35, %v280_v34  ;;  %v2868_v46 = vpack.c.bf16 %v293_v39, %v289_v38  ;;  %v288_v47 = vld [vmem:[#allocation3 + $0x1d0] sm:$0xff] }
  0x3e   :  { %2029 = vmatpush1.bf16.msra.mxu0 %v2835_v3  ;;  %v290_v43 = vld [vmem:[#allocation3 + $0x1e0] sm:$0xff]  ;;  %v292_v49 = vld [vmem:[#allocation3 + $0x1f0] sm:$0xff]  ;;  %v444_v29 = vunpack.c.0.s8 %v443_v26 }
  0x3f   :  { %2031 = vmatprep.subr.bf16.mxu0 %v2838_v6  ;;  %v2871_v50 = vpack.c.bf16 %v290_v43, %v286_v42  ;;  %v2875_v52 = vpack.c.bf16 %v292_v49, %v288_v47  ;;  %v57_v58 = vld [vmem:[%s3192_s3] sm:$0xf] }
  0x40   :  { %2061 = vmatpush1.bf16.msra.mxu1 %v2841_v9  ;;  %v62_v61 = vrot.slane %v57_v58, %v61_v56  ;;  %v66_v1 = vrot.slane %v57_v58, %v65_v59  ;;  %v70_v8 = vrot.slane %v57_v58, %v69_v62  ;;  %v74_v13 = vrot.slane %v57_v58, %v73_v2 }
  0x41   :  { %2063 = vmatprep.subr.bf16.mxu1 %v2844_v14  ;;  %v2921_v30 = vsub.s32 %v444_v29, %v60_v55 }
  0x42   :  { %2033 = vmatpush1.bf16.msra.mxu0 %v2847_v18 }
  0x43   :  { %2035 = vmatprep.subr.bf16.mxu0 %v2850_v23 }
  0x44   :  { %2065 = vmatpush1.bf16.msra.mxu1 %v2853_v27 }
  0x45   :  { %2067 = vmatprep.subr.bf16.mxu1 %v2856_v31 }
  0x46   :  { %2037 = vmatpush1.bf16.msra.mxu0 %v2859_v36 }
  0x47   :  { %2039 = vmatprep.subr.bf16.mxu0 %v2862_v40 }
  0x48   :  { %2069 = vmatpush1.bf16.msra.mxu1 %v2865_v44 }
  0x49   :  { %2071 = vmatprep.subr.bf16.mxu1 %v2868_v46 }
  0x4a   :  { %2041 = vmatpush1.bf16.msra.mxu0 %v2871_v50 }
  0x4b   :  { %2075 = vmatprep.subr.bf16.mxu0 %v2781_v10 }
  0x4c   :  { %2073 = vmatpush1.bf16.msra.mxu1 %v2875_v52 }
  0x4d   :  { %359 = vmatmul.mubr.f32.vlgmr.msra.gmra.mrb[0].mxu0 %v2699_v0  ;;  %2107 = vmatprep.subr.bf16.mxu1 %v2783_v11 }
  0x4e   :  { %2077 = vmatpush1.bf16.msra.mxu0 %v2786_v15  ;;  %552 = vmatprep.mubr.f32.mxu0 %v2699_v0 }
  0x4f   :  { %430 = vmatmul.mubr.f32.vlgmr.msra.gmra.mrb[4].mxu1 %v2699_v0  ;;  %2079 = vmatprep.subr.bf16.mxu0 %v2792_v20 }
  0x50   :  { %2109 = vmatpush1.bf16.msra.mxu1 %v2790_v19  ;;  %623 = vmatprep.mubr.f32.mxu1 %v2699_v0 }
  0x51   :  { %2111 = vmatprep.subr.bf16.mxu1 %v2795_v24 }
  0x52   :  { %2081 = vmatpush1.bf16.msra.mxu0 %v2799_v28 }
  0x53   :  { %2083 = vmatprep.subr.bf16.mxu0 %v2804_v33 }
  0x54   :  { %2113 = vmatpush1.bf16.msra.mxu1 %v2802_v32 }
  0x55   :  { %2115 = vmatprep.subr.bf16.mxu1 %v2808_v37 }
  0x56   :  { %2085 = vmatpush1.bf16.msra.mxu0 %v2811_v41 }
  0x57   :  { %2087 = vmatprep.subr.bf16.mxu0 %v2814_v45 }
  0x58   :  { %2117 = vmatpush1.bf16.msra.mxu1 %v2817_v48 }
  0x59   :  { %2119 = vmatprep.subr.bf16.mxu1 %v2820_v51 }
  0x5a   :  { %2089 = vmatpush1.bf16.msra.mxu0 %v2823_v54 }
  0x5b   :  { %2091 = vmatprep.subr.bf16.mxu0 %v2826_v57 }
  0x5c   :  { %2121 = vmatpush1.bf16.msra.mxu1 %v2829_v60 }
  0x5d   :  { %2123 = vmatprep.subr.bf16.mxu1 %v2832_v63 }
  0x5e   :  { %2093 = vmatpush1.bf16.msra.mxu0 %v2835_v3 }
  0x5f   :  { %2095 = vmatprep.subr.bf16.mxu0 %v2838_v6 }
  0x60   :  { %2125 = vmatpush1.bf16.msra.mxu1 %v2841_v9 }
  0x61   :  { %2127 = vmatprep.subr.bf16.mxu1 %v2844_v14 }
  0x62   :  { %2097 = vmatpush1.bf16.msra.mxu0 %v2847_v18 }
  0x63   :  { %2099 = vmatprep.subr.bf16.mxu0 %v2850_v23 }
  0x64   :  { %2129 = vmatpush1.bf16.msra.mxu1 %v2853_v27 }
  0x65   :  { %2131 = vmatprep.subr.bf16.mxu1 %v2856_v31 }
  0x66   :  { %2101 = vmatpush1.bf16.msra.mxu0 %v2859_v36 }
  0x67   :  { %2103 = vmatprep.subr.bf16.mxu0 %v2862_v40 }
  0x68   :  { %2133 = vmatpush1.bf16.msra.mxu1 %v2865_v44 }
  0x69   :  { %2135 = vmatprep.subr.bf16.mxu1 %v2868_v46 }
  0x6a   :  { %2105 = vmatpush1.bf16.msra.mxu0 %v2871_v50 }
  0x6b   :  { %2139 = vmatprep.subr.bf16.mxu0 %v2781_v10 }
  0x6c   :  { %2137 = vmatpush1.bf16.msra.mxu1 %v2875_v52 }
  0x6d   :  { %2171 = vmatprep.subr.bf16.mxu1 %v2783_v11 }
  0xfe   :  { %v149_v4 = vpop.f32.mrb[0].mxu1 }
  0xff   :  { %v150_v5 = vadd.f32 %v149_v4, %v62_v61  ;;  %v151_v7 = vpop.f32.mrb[1].mxu1 }
 0x100   :  { %v152_v12 = vadd.f32 %v151_v7, %v66_v1 }
 0x101   :  { %225 = vst [vmem:[#allocation2] sm:$0xff] %v150_v5 }
 0x102   :  { %226 = vst [vmem:[#allocation2 + $0x8] sm:$0xff] %v152_v12  ;;  %v220_v16 = vpop.f32.mrb[2].mxu1 }
 0x103   :  { %v221_v17 = vadd.f32 %v220_v16, %v70_v8  ;;  %v222_v21 = vpop.f32.mrb[3].mxu1 }
 0x104   :  { %v223_v22 = vadd.f32 %v222_v21, %v74_v13 }
 0x105   :  { %227 = vst [vmem:[#allocation2 + $0x10] sm:$0xff] %v221_v17 }
 0x106   :  { %228 = vst [vmem:[#allocation2 + $0x18] sm:$0xff] %v223_v22 }
 0x10d   :  { %v229_v58 = vld [vmem:[#allocation2] ss:$8 sm:$0xf] }
 0x120   :  { %v360_v34 = vpop.f32.mrb[0].mxu0 }
 0x121   :  { %v362_v35 = vpop.f32.mrb[1].mxu0 }
 0x122   :  { %v431_v38 = vpop.f32.mrb[4].mxu1  ;;  %v440_v39 = vcombine.low %v360_v34, %v362_v35 }
 0x123   :  { %v433_v42 = vpop.f32.mrb[5].mxu1 }
 0x124   :  { %v448_v43 = vrot.slane %v440_v39, %v2921_v30  ;;  %v441_v47 = vcombine.low %v431_v38, %v433_v42 }
 0x126   :  { %v455_v49 = vrot.slane %v441_v47, %v2921_v30 }
 0x128   :  { %v456_v53 = vcombine.low %v448_v43, %v455_v49  ;;  %v487_v43 = vld [vmem:[#allocation2 + $0x1] ss:$8 sm:$0xf] }
 0x12a   :  { %v463_v56 = vrot.slane %v456_v53, %v2921_v30 }
 0x12c   :  { %v465_v59 = vadd.f32 %v463_v56, %v229_v58 }
 0x12e   :  { %v1950_v61 = vmul.f32 -1.442695, %v465_v59  ;;  %v473_v1 = vrot.slane %v465_v59, 3 }
 0x130   :  { %2557 = vpow2.f32 %v1950_v61 }
 0x13a   :  { %v2558_v62 = vpop.eup %2557 }
 0x13b   :  { %v469_v55 = vadd.f32 1.0, %v2558_v62 }
 0x13d   :  { %2559 = vrcp.f32 %v469_v55 }
 0x13e   :  { %2561 = vtanh.f32 %v473_v1 }
 0x147   :  { %v2560_v2 = vpop.eup %2559 }
 0x148   :  { %v477_v4 = vrot.slane %v2560_v2, 1  ;;  %v2562_v5 = vpop.eup %2561  ;;  %v483_v13 = vrot.slane %v2560_v2, 2 }
 0x149   :  { %v480_v7 = vmul.f32 %v2562_v5, %v2560_v2 }
 0x14a   :  { %v479_v8 = vmul.f32 0.0, %v477_v4 }
 0x14c   :  { %v2926_v12 = vadd.f32 %v480_v7, %v479_v8 }
 0x14e   :  { %2563 = vtanh.f32 %v2926_v12 }
 0x158   :  { %v2564_v16 = vpop.eup %2563 }
 0x159   :  { %v485_v17 = vmul.f32 %v2564_v16, %v483_v13 }
 0x15b   :  { %553 = vmatmul.mubr.f32.vlgmr.msra.gmra.mrb[2].mxu0 %v485_v17  ;;  %624 = vmatmul.mubr.f32.vlgmr.msra.gmra.mrb[6].mxu1 %v485_v17 }
 0x15c   :  { %2141 = vmatpush1.bf16.msra.mxu0 %v2786_v15  ;;  %2173 = vmatpush1.bf16.msra.mxu1 %v2790_v19 }
 0x15d   :  { %2143 = vmatprep.subr.bf16.mxu0 %v2792_v20  ;;  %2175 = vmatprep.subr.bf16.mxu1 %v2795_v24 }
 0x15e   :  { %746 = vmatprep.mubr.f32.mxu0 %v2699_v0  ;;  %817 = vmatprep.mubr.f32.mxu1 %v2699_v0 }
 0x160   :  { %2145 = vmatpush1.bf16.msra.mxu0 %v2799_v28  ;;  %2177 = vmatpush1.bf16.msra.mxu1 %v2802_v32 }
 0x161   :  { %2147 = vmatprep.subr.bf16.mxu0 %v2804_v33  ;;  %2179 = vmatprep.subr.bf16.mxu1 %v2808_v37 }
 0x164   :  { %2149 = vmatpush1.bf16.msra.mxu0 %v2811_v41  ;;  %2181 = vmatpush1.bf16.msra.mxu1 %v2817_v48 }
 0x165   :  { %2151 = vmatprep.subr.bf16.mxu0 %v2814_v45  ;;  %2183 = vmatprep.subr.bf16.mxu1 %v2820_v51 }
 0x168   :  { %2153 = vmatpush1.bf16.msra.mxu0 %v2823_v54  ;;  %2185 = vmatpush1.bf16.msra.mxu1 %v2829_v60 }
 0x169   :  { %2155 = vmatprep.subr.bf16.mxu0 %v2826_v57  ;;  %2187 = vmatprep.subr.bf16.mxu1 %v2832_v63 }
 0x16c   :  { %2157 = vmatpush1.bf16.msra.mxu0 %v2835_v3  ;;  %2189 = vmatpush1.bf16.msra.mxu1 %v2841_v9 }
 0x16d   :  { %2159 = vmatprep.subr.bf16.mxu0 %v2838_v6  ;;  %2191 = vmatprep.subr.bf16.mxu1 %v2844_v14 }
 0x170   :  { %2161 = vmatpush1.bf16.msra.mxu0 %v2847_v18  ;;  %2193 = vmatpush1.bf16.msra.mxu1 %v2853_v27 }
 0x171   :  { %2163 = vmatprep.subr.bf16.mxu0 %v2850_v23  ;;  %2195 = vmatprep.subr.bf16.mxu1 %v2856_v31 }
 0x174   :  { %2165 = vmatpush1.bf16.msra.mxu0 %v2859_v36  ;;  %2197 = vmatpush1.bf16.msra.mxu1 %v2865_v44 }
 0x175   :  { %2167 = vmatprep.subr.bf16.mxu0 %v2862_v40  ;;  %2199 = vmatprep.subr.bf16.mxu1 %v2868_v46 }
 0x178   :  { %2169 = vmatpush1.bf16.msra.mxu0 %v2871_v50  ;;  %2201 = vmatpush1.bf16.msra.mxu1 %v2875_v52 }
 0x179   :  { %2203 = vmatprep.subr.bf16.mxu0 %v2781_v10  ;;  %2235 = vmatprep.subr.bf16.mxu1 %v2783_v11 }
 0x22e   :  { %v554_v21 = vpop.f32.mrb[2].mxu0  ;;  %v625_v22 = vpop.f32.mrb[6].mxu1 }
 0x22f   :  { %v556_v25 = vpop.f32.mrb[3].mxu0  ;;  %v627_v26 = vpop.f32.mrb[7].mxu1 }
 0x230   :  { %v634_v29 = vcombine.low %v554_v21, %v556_v25  ;;  %v635_v34 = vcombine.low %v625_v22, %v627_v26 }
 0x232   :  { %v642_v35 = vrot.slane %v634_v29, %v2921_v30  ;;  %v649_v38 = vrot.slane %v635_v34, %v2921_v30  ;;  %v681_v34 = vld [vmem:[#allocation2 + $0x2] ss:$8 sm:$0xf] }
 0x234   :  { %v650_v39 = vcombine.low %v642_v35, %v649_v38 }
 0x236   :  { %v657_v42 = vrot.slane %v650_v39, %v2921_v30 }
 0x238   :  { %v659_v47 = vadd.f32 %v657_v42, %v487_v43 }
 0x23a   :  { %v1951_v49 = vmul.f32 -1.442695, %v659_v47  ;;  %v667_v58 = vrot.slane %v659_v47, 3 }
 0x23c   :  { %2565 = vpow2.f32 %v1951_v49 }
 0x246   :  { %v2566_v53 = vpop.eup %2565 }
 0x247   :  { %v663_v56 = vadd.f32 1.0, %v2566_v53 }
 0x249   :  { %2567 = vrcp.f32 %v663_v56 }
 0x24a   :  { %2569 = vtanh.f32 %v667_v58 }
 0x253   :  { %v2568_v59 = vpop.eup %2567 }
 0x254   :  { %v671_v61 = vrot.slane %v2568_v59, 1  ;;  %v2570_v62 = vpop.eup %2569  ;;  %v677_v4 = vrot.slane %v2568_v59, 2 }
 0x255   :  { %v674_v55 = vmul.f32 %v2570_v62, %v2568_v59 }
 0x256   :  { %v673_v1 = vmul.f32 %v671_v61, %v2926_v12 }
 0x258   :  { %v2967_v2 = vadd.f32 %v674_v55, %v673_v1 }
 0x25a   :  { %2571 = vtanh.f32 %v2967_v2 }
 0x264   :  { %v2572_v5 = vpop.eup %2571 }
 0x265   :  { %v679_v7 = vmul.f32 %v2572_v5, %v677_v4 }
 0x267   :  { %747 = vmatmul.mubr.f32.vlgmr.msra.gmra.mrb[4].mxu0 %v679_v7  ;;  %818 = vmatmul.mubr.f32.vlgmr.msra.gmra.mrb[8].mxu1 %v679_v7 }
 0x268   :  { %2205 = vmatpush1.bf16.msra.mxu0 %v2786_v15  ;;  %2237 = vmatpush1.bf16.msra.mxu1 %v2790_v19 }
 0x269   :  { %2207 = vmatprep.subr.bf16.mxu0 %v2792_v20  ;;  %2239 = vmatprep.subr.bf16.mxu1 %v2795_v24 }
 0x26a   :  { %940 = vmatprep.mubr.f32.mxu0 %v2699_v0  ;;  %1011 = vmatprep.mubr.f32.mxu1 %v2699_v0 }
 0x26c   :  { %2209 = vmatpush1.bf16.msra.mxu0 %v2799_v28  ;;  %2241 = vmatpush1.bf16.msra.mxu1 %v2802_v32 }
 0x26d   :  { %2211 = vmatprep.subr.bf16.mxu0 %v2804_v33  ;;  %2243 = vmatprep.subr.bf16.mxu1 %v2808_v37 }
 0x270   :  { %2213 = vmatpush1.bf16.msra.mxu0 %v2811_v41  ;;  %2245 = vmatpush1.bf16.msra.mxu1 %v2817_v48 }
 0x271   :  { %2215 = vmatprep.subr.bf16.mxu0 %v2814_v45  ;;  %2247 = vmatprep.subr.bf16.mxu1 %v2820_v51 }
 0x274   :  { %2217 = vmatpush1.bf16.msra.mxu0 %v2823_v54  ;;  %2249 = vmatpush1.bf16.msra.mxu1 %v2829_v60 }
 0x275   :  { %2219 = vmatprep.subr.bf16.mxu0 %v2826_v57  ;;  %2251 = vmatprep.subr.bf16.mxu1 %v2832_v63 }
 0x278   :  { %2221 = vmatpush1.bf16.msra.mxu0 %v2835_v3  ;;  %2253 = vmatpush1.bf16.msra.mxu1 %v2841_v9 }
 0x279   :  { %2223 = vmatprep.subr.bf16.mxu0 %v2838_v6  ;;  %2255 = vmatprep.subr.bf16.mxu1 %v2844_v14 }
 0x27c   :  { %2225 = vmatpush1.bf16.msra.mxu0 %v2847_v18  ;;  %2257 = vmatpush1.bf16.msra.mxu1 %v2853_v27 }
 0x27d   :  { %2227 = vmatprep.subr.bf16.mxu0 %v2850_v23  ;;  %2259 = vmatprep.subr.bf16.mxu1 %v2856_v31 }
 0x280   :  { %2229 = vmatpush1.bf16.msra.mxu0 %v2859_v36  ;;  %2261 = vmatpush1.bf16.msra.mxu1 %v2865_v44 }
 0x281   :  { %2231 = vmatprep.subr.bf16.mxu0 %v2862_v40  ;;  %2263 = vmatprep.subr.bf16.mxu1 %v2868_v46 }
 0x284   :  { %2233 = vmatpush1.bf16.msra.mxu0 %v2871_v50  ;;  %2265 = vmatpush1.bf16.msra.mxu1 %v2875_v52 }
 0x285   :  { %2267 = vmatprep.subr.bf16.mxu0 %v2781_v10  ;;  %2299 = vmatprep.subr.bf16.mxu1 %v2783_v11 }
 0x33a   :  { %v748_v8 = vpop.f32.mrb[4].mxu0  ;;  %v819_v12 = vpop.f32.mrb[8].mxu1 }
 0x33b   :  { %v750_v13 = vpop.f32.mrb[5].mxu0  ;;  %v821_v16 = vpop.f32.mrb[9].mxu1 }
 0x33c   :  { %v828_v17 = vcombine.low %v748_v8, %v750_v13  ;;  %v829_v21 = vcombine.low %v819_v12, %v821_v16 }
 0x33e   :  { %v836_v22 = vrot.slane %v828_v17, %v2921_v30  ;;  %v843_v25 = vrot.slane %v829_v21, %v2921_v30  ;;  %v875_v21 = vld [vmem:[#allocation2 + $0x3] ss:$8 sm:$0xf] }
 0x340   :  { %v844_v26 = vcombine.low %v836_v22, %v843_v25 }
 0x342   :  { %v851_v29 = vrot.slane %v844_v26, %v2921_v30 }
 0x344   :  { %v853_v35 = vadd.f32 %v851_v29, %v681_v34 }
 0x346   :  { %v1952_v38 = vmul.f32 -1.442695, %v853_v35  ;;  %v861_v43 = vrot.slane %v853_v35, 3 }
 0x348   :  { %2573 = vpow2.f32 %v1952_v38 }
 0x352   :  { %v2574_v39 = vpop.eup %2573 }
 0x353   :  { %v857_v42 = vadd.f32 1.0, %v2574_v39 }
 0x355   :  { %2575 = vrcp.f32 %v857_v42 }
 0x356   :  { %2577 = vtanh.f32 %v861_v43 }
 0x35f   :  { %v2576_v47 = vpop.eup %2575 }
 0x360   :  { %v865_v49 = vrot.slane %v2576_v47, 1  ;;  %v2578_v53 = vpop.eup %2577  ;;  %v871_v61 = vrot.slane %v2576_v47, 2 }
 0x361   :  { %v868_v56 = vmul.f32 %v2578_v53, %v2576_v47 }
 0x362   :  { %v867_v58 = vmul.f32 %v865_v49, %v2967_v2 }
 0x364   :  { %v3008_v59 = vadd.f32 %v868_v56, %v867_v58 }
 0x366   :  { %2579 = vtanh.f32 %v3008_v59 }
 0x370   :  { %v2580_v62 = vpop.eup %2579 }
 0x371   :  { %v873_v55 = vmul.f32 %v2580_v62, %v871_v61 }
 0x373   :  { %941 = vmatmul.mubr.f32.vlgmr.msra.gmra.mrb[6].mxu0 %v873_v55  ;;  %1012 = vmatmul.mubr.f32.vlgmr.msra.gmra.mrb[10].mxu1 %v873_v55 }
 0x374   :  { %2269 = vmatpush1.bf16.msra.mxu0 %v2786_v15  ;;  %2301 = vmatpush1.bf16.msra.mxu1 %v2790_v19 }
 0x375   :  { %2271 = vmatprep.subr.bf16.mxu0 %v2792_v20  ;;  %2303 = vmatprep.subr.bf16.mxu1 %v2795_v24 }
 0x376   :  { %1134 = vmatprep.mubr.f32.mxu0 %v2699_v0  ;;  %1205 = vmatprep.mubr.f32.mxu1 %v2699_v0 }
 0x378   :  { %2273 = vmatpush1.bf16.msra.mxu0 %v2799_v28  ;;  %2305 = vmatpush1.bf16.msra.mxu1 %v2802_v32 }
 0x379   :  { %2275 = vmatprep.subr.bf16.mxu0 %v2804_v33  ;;  %2307 = vmatprep.subr.bf16.mxu1 %v2808_v37 }
 0x37c   :  { %2277 = vmatpush1.bf16.msra.mxu0 %v2811_v41  ;;  %2309 = vmatpush1.bf16.msra.mxu1 %v2817_v48 }
 0x37d   :  { %2279 = vmatprep.subr.bf16.mxu0 %v2814_v45  ;;  %2311 = vmatprep.subr.bf16.mxu1 %v2820_v51 }
 0x380   :  { %2281 = vmatpush1.bf16.msra.mxu0 %v2823_v54  ;;  %2313 = vmatpush1.bf16.msra.mxu1 %v2829_v60 }
 0x381   :  { %2283 = vmatprep.subr.bf16.mxu0 %v2826_v57  ;;  %2315 = vmatprep.subr.bf16.mxu1 %v2832_v63 }
 0x384   :  { %2285 = vmatpush1.bf16.msra.mxu0 %v2835_v3  ;;  %2317 = vmatpush1.bf16.msra.mxu1 %v2841_v9 }
 0x385   :  { %2287 = vmatprep.subr.bf16.mxu0 %v2838_v6  ;;  %2319 = vmatprep.subr.bf16.mxu1 %v2844_v14 }
 0x388   :  { %2289 = vmatpush1.bf16.msra.mxu0 %v2847_v18  ;;  %2321 = vmatpush1.bf16.msra.mxu1 %v2853_v27 }
 0x389   :  { %2291 = vmatprep.subr.bf16.mxu0 %v2850_v23  ;;  %2323 = vmatprep.subr.bf16.mxu1 %v2856_v31 }
 0x38c   :  { %2293 = vmatpush1.bf16.msra.mxu0 %v2859_v36  ;;  %2325 = vmatpush1.bf16.msra.mxu1 %v2865_v44 }
 0x38d   :  { %2295 = vmatprep.subr.bf16.mxu0 %v2862_v40  ;;  %2327 = vmatprep.subr.bf16.mxu1 %v2868_v46 }
 0x390   :  { %2297 = vmatpush1.bf16.msra.mxu0 %v2871_v50  ;;  %2329 = vmatpush1.bf16.msra.mxu1 %v2875_v52 }
 0x391   :  { %2331 = vmatprep.subr.bf16.mxu0 %v2781_v10  ;;  %2363 = vmatprep.subr.bf16.mxu1 %v2783_v11 }
 0x446   :  { %v942_v1 = vpop.f32.mrb[6].mxu0  ;;  %v1013_v2 = vpop.f32.mrb[10].mxu1 }
 0x447   :  { %v944_v4 = vpop.f32.mrb[7].mxu0  ;;  %v1015_v5 = vpop.f32.mrb[11].mxu1 }
 0x448   :  { %v1022_v7 = vcombine.low %v942_v1, %v944_v4  ;;  %v1023_v8 = vcombine.low %v1013_v2, %v1015_v5 }
 0x44a   :  { %v1030_v12 = vrot.slane %v1022_v7, %v2921_v30  ;;  %v1037_v13 = vrot.slane %v1023_v8, %v2921_v30  ;;  %v1069_v8 = vld [vmem:[#allocation2 + $0x4] ss:$8 sm:$0xf] }
 0x44c   :  { %v1038_v16 = vcombine.low %v1030_v12, %v1037_v13 }
 0x44e   :  { %v1045_v17 = vrot.slane %v1038_v16, %v2921_v30 }
 0x450   :  { %v1047_v22 = vadd.f32 %v1045_v17, %v875_v21 }
 0x452   :  { %v1953_v25 = vmul.f32 -1.442695, %v1047_v22  ;;  %v1055_v34 = vrot.slane %v1047_v22, 3 }
 0x454   :  { %2581 = vpow2.f32 %v1953_v25 }
 0x45e   :  { %v2582_v26 = vpop.eup %2581 }
 0x45f   :  { %v1051_v29 = vadd.f32 1.0, %v2582_v26 }
 0x461   :  { %2583 = vrcp.f32 %v1051_v29 }
 0x462   :  { %2585 = vtanh.f32 %v1055_v34 }
 0x46b   :  { %v2584_v35 = vpop.eup %2583 }
 0x46c   :  { %v1059_v38 = vrot.slane %v2584_v35, 1  ;;  %v2586_v39 = vpop.eup %2585  ;;  %v1065_v49 = vrot.slane %v2584_v35, 2 }
 0x46d   :  { %v1062_v42 = vmul.f32 %v2586_v39, %v2584_v35 }
 0x46e   :  { %v1061_v43 = vmul.f32 %v1059_v38, %v3008_v59 }
 0x470   :  { %v3049_v47 = vadd.f32 %v1062_v42, %v1061_v43 }
 0x472   :  { %2587 = vtanh.f32 %v3049_v47 }
 0x47c   :  { %v2588_v53 = vpop.eup %2587 }
 0x47d   :  { %v1067_v56 = vmul.f32 %v2588_v53, %v1065_v49 }
 0x47f   :  { %1135 = vmatmul.mubr.f32.vlgmr.msra.gmra.mrb[8].mxu0 %v1067_v56  ;;  %1206 = vmatmul.mubr.f32.vlgmr.msra.gmra.mrb[12].mxu1 %v1067_v56 }
 0x480   :  { %2333 = vmatpush1.bf16.msra.mxu0 %v2786_v15  ;;  %2365 = vmatpush1.bf16.msra.mxu1 %v2790_v19 }
 0x481   :  { %2335 = vmatprep.subr.bf16.mxu0 %v2792_v20  ;;  %2367 = vmatprep.subr.bf16.mxu1 %v2795_v24 }
 0x482   :  { %1328 = vmatprep.mubr.f32.mxu0 %v2699_v0  ;;  %1399 = vmatprep.mubr.f32.mxu1 %v2699_v0 }
 0x484   :  { %2337 = vmatpush1.bf16.msra.mxu0 %v2799_v28  ;;  %2369 = vmatpush1.bf16.msra.mxu1 %v2802_v32 }
 0x485   :  { %2339 = vmatprep.subr.bf16.mxu0 %v2804_v33  ;;  %2371 = vmatprep.subr.bf16.mxu1 %v2808_v37 }
 0x488   :  { %2341 = vmatpush1.bf16.msra.mxu0 %v2811_v41  ;;  %2373 = vmatpush1.bf16.msra.mxu1 %v2817_v48 }
 0x489   :  { %2343 = vmatprep.subr.bf16.mxu0 %v2814_v45  ;;  %2375 = vmatprep.subr.bf16.mxu1 %v2820_v51 }
 0x48c   :  { %2345 = vmatpush1.bf16.msra.mxu0 %v2823_v54  ;;  %2377 = vmatpush1.bf16.msra.mxu1 %v2829_v60 }
 0x48d   :  { %2347 = vmatprep.subr.bf16.mxu0 %v2826_v57  ;;  %2379 = vmatprep.subr.bf16.mxu1 %v2832_v63 }
 0x490   :  { %2349 = vmatpush1.bf16.msra.mxu0 %v2835_v3  ;;  %2381 = vmatpush1.bf16.msra.mxu1 %v2841_v9 }
 0x491   :  { %2351 = vmatprep.subr.bf16.mxu0 %v2838_v6  ;;  %2383 = vmatprep.subr.bf16.mxu1 %v2844_v14 }
 0x494   :  { %2353 = vmatpush1.bf16.msra.mxu0 %v2847_v18  ;;  %2385 = vmatpush1.bf16.msra.mxu1 %v2853_v27 }
 0x495   :  { %2355 = vmatprep.subr.bf16.mxu0 %v2850_v23  ;;  %2387 = vmatprep.subr.bf16.mxu1 %v2856_v31 }
 0x498   :  { %2357 = vmatpush1.bf16.msra.mxu0 %v2859_v36  ;;  %2389 = vmatpush1.bf16.msra.mxu1 %v2865_v44 }
 0x499   :  { %2359 = vmatprep.subr.bf16.mxu0 %v2862_v40  ;;  %2391 = vmatprep.subr.bf16.mxu1 %v2868_v46 }
 0x49c   :  { %2361 = vmatpush1.bf16.msra.mxu0 %v2871_v50  ;;  %2393 = vmatpush1.bf16.msra.mxu1 %v2875_v52 }
 0x49d   :  { %2395 = vmatprep.subr.bf16.mxu0 %v2781_v10  ;;  %2427 = vmatprep.subr.bf16.mxu1 %v2783_v11 }
 0x552   :  { %v1136_v58 = vpop.f32.mrb[8].mxu0  ;;  %v1207_v59 = vpop.f32.mrb[12].mxu1 }
 0x553   :  { %v1138_v61 = vpop.f32.mrb[9].mxu0  ;;  %v1209_v62 = vpop.f32.mrb[13].mxu1 }
 0x554   :  { %v1216_v55 = vcombine.low %v1136_v58, %v1138_v61  ;;  %v1217_v1 = vcombine.low %v1207_v59, %v1209_v62 }
 0x556   :  { %v1224_v2 = vrot.slane %v1216_v55, %v2921_v30  ;;  %v1231_v4 = vrot.slane %v1217_v1, %v2921_v30  ;;  %v1263_v1 = vld [vmem:[#allocation2 + $0x5] ss:$8 sm:$0xf] }
 0x558   :  { %v1232_v5 = vcombine.low %v1224_v2, %v1231_v4 }
 0x55a   :  { %v1239_v7 = vrot.slane %v1232_v5, %v2921_v30 }
 0x55c   :  { %v1241_v12 = vadd.f32 %v1239_v7, %v1069_v8 }
 0x55e   :  { %v1954_v13 = vmul.f32 -1.442695, %v1241_v12  ;;  %v1249_v21 = vrot.slane %v1241_v12, 3 }
 0x560   :  { %2589 = vpow2.f32 %v1954_v13 }
 0x56a   :  { %v2590_v16 = vpop.eup %2589 }
 0x56b   :  { %v1245_v17 = vadd.f32 1.0, %v2590_v16 }
 0x56d   :  { %2591 = vrcp.f32 %v1245_v17 }
 0x56e   :  { %2593 = vtanh.f32 %v1249_v21 }
 0x577   :  { %v2592_v22 = vpop.eup %2591 }
 0x578   :  { %v1253_v25 = vrot.slane %v2592_v22, 1  ;;  %v2594_v26 = vpop.eup %2593  ;;  %v1259_v38 = vrot.slane %v2592_v22, 2 }
 0x579   :  { %v1256_v29 = vmul.f32 %v2594_v26, %v2592_v22  ;;  %v1847_v26 = vld [vmem:[#allocation6 + $0x18] sm:$0xff] }
 0x57a   :  { %v1255_v34 = vmul.f32 %v1253_v25, %v3049_v47 }
 0x57c   :  { %v3090_v35 = vadd.f32 %v1256_v29, %v1255_v34  ;;  %v1848_v34 = vld [vmem:[#allocation6 + $0x20] sm:$0xff] }
 0x57e   :  { %2595 = vtanh.f32 %v3090_v35 }
 0x588   :  { %v2596_v39 = vpop.eup %2595 }
 0x589   :  { %v1261_v42 = vmul.f32 %v2596_v39, %v1259_v38  ;;  %v1850_v39 = vld [vmem:[#allocation6 + $0x30] sm:$0xff] }
 0x58b   :  { %1329 = vmatmul.mubr.f32.vlgmr.msra.gmra.mrb[10].mxu0 %v1261_v42  ;;  %1400 = vmatmul.mubr.f32.vlgmr.msra.gmra.mrb[14].mxu1 %v1261_v42  ;;  %v1851_v42 = vld [vmem:[#allocation6 + $0x38] sm:$0xff] }
 0x58c   :  { %2397 = vmatpush1.bf16.msra.mxu0 %v2786_v15  ;;  %2429 = vmatpush1.bf16.msra.mxu1 %v2790_v19 }
 0x58d   :  { %2399 = vmatprep.subr.bf16.mxu0 %v2792_v20  ;;  %2431 = vmatprep.subr.bf16.mxu1 %v2795_v24 }
 0x58e   :  { %1522 = vmatprep.mubr.f32.mxu0 %v2699_v0  ;;  %1593 = vmatprep.mubr.f32.mxu1 %v2699_v0 }
 0x590   :  { %2401 = vmatpush1.bf16.msra.mxu0 %v2799_v28  ;;  %2433 = vmatpush1.bf16.msra.mxu1 %v2802_v32 }
 0x591   :  { %2403 = vmatprep.subr.bf16.mxu0 %v2804_v33  ;;  %2435 = vmatprep.subr.bf16.mxu1 %v2808_v37 }
 0x594   :  { %2405 = vmatpush1.bf16.msra.mxu0 %v2811_v41  ;;  %2437 = vmatpush1.bf16.msra.mxu1 %v2817_v48 }
 0x595   :  { %2407 = vmatprep.subr.bf16.mxu0 %v2814_v45  ;;  %2439 = vmatprep.subr.bf16.mxu1 %v2820_v51 }
 0x598   :  { %2409 = vmatpush1.bf16.msra.mxu0 %v2823_v54  ;;  %2441 = vmatpush1.bf16.msra.mxu1 %v2829_v60 }
 0x599   :  { %2411 = vmatprep.subr.bf16.mxu0 %v2826_v57  ;;  %2443 = vmatprep.subr.bf16.mxu1 %v2832_v63 }
 0x59c   :  { %2413 = vmatpush1.bf16.msra.mxu0 %v2835_v3  ;;  %2445 = vmatpush1.bf16.msra.mxu1 %v2841_v9 }
 0x59d   :  { %2415 = vmatprep.subr.bf16.mxu0 %v2838_v6  ;;  %2447 = vmatprep.subr.bf16.mxu1 %v2844_v14 }
 0x5a0   :  { %2417 = vmatpush1.bf16.msra.mxu0 %v2847_v18  ;;  %2449 = vmatpush1.bf16.msra.mxu1 %v2853_v27 }
 0x5a1   :  { %2419 = vmatprep.subr.bf16.mxu0 %v2850_v23  ;;  %2451 = vmatprep.subr.bf16.mxu1 %v2856_v31 }
 0x5a4   :  { %2421 = vmatpush1.bf16.msra.mxu0 %v2859_v36  ;;  %2453 = vmatpush1.bf16.msra.mxu1 %v2865_v44 }
 0x5a5   :  { %2423 = vmatprep.subr.bf16.mxu0 %v2862_v40  ;;  %2455 = vmatprep.subr.bf16.mxu1 %v2868_v46 }
 0x5a8   :  { %2425 = vmatpush1.bf16.msra.mxu0 %v2871_v50  ;;  %2457 = vmatpush1.bf16.msra.mxu1 %v2875_v52 }
 0x5a9   :  { %2459 = vmatprep.subr.bf16.mxu0 %v2781_v10  ;;  %2491 = vmatprep.subr.bf16.mxu1 %v2783_v11 }
 0x65e   :  { %v1330_v43 = vpop.f32.mrb[10].mxu0  ;;  %v1401_v47 = vpop.f32.mrb[14].mxu1 }
 0x65f   :  { %v1332_v49 = vpop.f32.mrb[11].mxu0  ;;  %v1403_v53 = vpop.f32.mrb[15].mxu1 }
 0x660   :  { %v1410_v56 = vcombine.low %v1330_v43, %v1332_v49  ;;  %v1411_v58 = vcombine.low %v1401_v47, %v1403_v53  ;;  %v2532_v43 = vpack.c.bf16 %v1851_v42, %v1850_v39  ;;  %v1852_v47 = vld [vmem:[#allocation6 + $0x40] sm:$0xff]  ;;  %v1853_v49 = vld [vmem:[#allocation6 + $0x48] sm:$0xff] }
 0x661   :  { %v2535_v53 = vpack.c.bf16 %v1853_v49, %v1852_v47 }
 0x662   :  { %v1418_v59 = vrot.slane %v1410_v56, %v2921_v30  ;;  %v1425_v61 = vrot.slane %v1411_v58, %v2921_v30  ;;  %v1854_v56 = vld [vmem:[#allocation6 + $0x50] sm:$0xff]  ;;  %v1855_v58 = vld [vmem:[#allocation6 + $0x58] sm:$0xff] }
 0x664   :  { %v1426_v62 = vcombine.low %v1418_v59, %v1425_v61  ;;  %v1856_v59 = vld [vmem:[#allocation6 + $0x60] sm:$0xff]  ;;  %v1857_v61 = vld [vmem:[#allocation6 + $0x68] sm:$0xff] }
 0x666   :  { %v1433_v55 = vrot.slane %v1426_v62, %v2921_v30  ;;  %v2541_v62 = vpack.c.bf16 %v1857_v61, %v1856_v59 }
 0x668   :  { %v1435_v2 = vadd.f32 %v1433_v55, %v1263_v1  ;;  %v1858_v55 = vld [vmem:[#allocation6 + $0x70] sm:$0xff]  ;;  %v1859_v1 = vld [vmem:[#allocation6 + $0x78] sm:$0xff] }
 0x66a   :  { %v1955_v4 = vmul.f32 -1.442695, %v1435_v2  ;;  %v1443_v11 = vrot.slane %v1435_v2, 3  ;;  %v2544_v2 = vpack.c.bf16 %v1859_v1, %v1858_v55 }
 0x66c   :  { %2597 = vpow2.f32 %v1955_v4 }
 0x676   :  { %v2598_v10 = vpop.eup %2597 }
 0x677   :  { %v1439_v5 = vadd.f32 1.0, %v2598_v10 }
 0x679   :  { %2599 = vrcp.f32 %v1439_v5 }
 0x67a   :  { %2601 = vtanh.f32 %v1443_v11 }
 0x683   :  { %v2600_v7 = vpop.eup %2599 }
 0x684   :  { %v1447_v8 = vrot.slane %v2600_v7, 1  ;;  %v2602_v12 = vpop.eup %2601  ;;  %v1453_v21 = vrot.slane %v2600_v7, 2 }
 0x685   :  { %v1450_v13 = vmul.f32 %v2602_v12, %v2600_v7 }
 0x686   :  { %v1449_v16 = vmul.f32 %v1447_v8, %v3090_v35  ;;  %v1849_v35 = vld [vmem:[#allocation6 + $0x28] sm:$0xff] }
 0x687   :  { %v2529_v38 = vpack.c.bf16 %v1849_v35, %v1848_v34 }
 0x688   :  { %v1451_v17 = vadd.f32 %v1450_v13, %v1449_v16 }
 0x68a   :  { %2603 = vtanh.f32 %v1451_v17 }
 0x694   :  { %v2604_v22 = vpop.eup %2603 }
 0x695   :  { %v1455_v25 = vmul.f32 %v2604_v22, %v1453_v21  ;;  %v1651_v21 = vld [vmem:[#allocation2 + $0x7] ss:$8 sm:$0xf] }
 0x697   :  { %1523 = vmatmul.mubr.f32.vlgmr.msra.gmra.mrb[12].mxu0 %v1455_v25  ;;  %1594 = vmatmul.mubr.f32.vlgmr.msra.gmra.mrb[16].mxu1 %v1455_v25 }
 0x698   :  { %2461 = vmatpush1.bf16.msra.mxu0 %v2786_v15  ;;  %2493 = vmatpush1.bf16.msra.mxu1 %v2790_v19 }
 0x699   :  { %2463 = vmatprep.subr.bf16.mxu0 %v2792_v20  ;;  %2495 = vmatprep.subr.bf16.mxu1 %v2795_v24 }
 0x69a   :  { %1716 = vmatprep.mubr.f32.mxu0 %v2699_v0  ;;  %1787 = vmatprep.mubr.f32.mxu1 %v2699_v0 }
 0x69c   :  { %2465 = vmatpush1.bf16.msra.mxu0 %v2799_v28  ;;  %2497 = vmatpush1.bf16.msra.mxu1 %v2802_v32 }
 0x69d   :  { %2467 = vmatprep.subr.bf16.mxu0 %v2804_v33  ;;  %2499 = vmatprep.subr.bf16.mxu1 %v2808_v37 }
 0x6a0   :  { %2469 = vmatpush1.bf16.msra.mxu0 %v2811_v41  ;;  %2501 = vmatpush1.bf16.msra.mxu1 %v2817_v48  ;;  %v1457_v48 = vld [vmem:[#allocation2 + $0x6] ss:$8 sm:$0xf] }
 0x6a1   :  { %2471 = vmatprep.subr.bf16.mxu0 %v2814_v45  ;;  %2503 = vmatprep.subr.bf16.mxu1 %v2820_v51 }
 0x6a4   :  { %2473 = vmatpush1.bf16.msra.mxu0 %v2823_v54  ;;  %2505 = vmatpush1.bf16.msra.mxu1 %v2829_v60 }
 0x6a5   :  { %2475 = vmatprep.subr.bf16.mxu0 %v2826_v57  ;;  %2507 = vmatprep.subr.bf16.mxu1 %v2832_v63 }
 0x6a8   :  { %2477 = vmatpush1.bf16.msra.mxu0 %v2835_v3  ;;  %2509 = vmatpush1.bf16.msra.mxu1 %v2841_v9 }
 0x6a9   :  { %2479 = vmatprep.subr.bf16.mxu0 %v2838_v6  ;;  %2511 = vmatprep.subr.bf16.mxu1 %v2844_v14 }
 0x6ac   :  { %2481 = vmatpush1.bf16.msra.mxu0 %v2847_v18  ;;  %2513 = vmatpush1.bf16.msra.mxu1 %v2853_v27 }
 0x6ad   :  { %2483 = vmatprep.subr.bf16.mxu0 %v2850_v23  ;;  %2515 = vmatprep.subr.bf16.mxu1 %v2856_v31 }
 0x6b0   :  { %2485 = vmatpush1.bf16.msra.mxu0 %v2859_v36  ;;  %2517 = vmatpush1.bf16.msra.mxu1 %v2865_v44  ;;  %v1845_v44 = vld [vmem:[#allocation6 + $0x8] sm:$0xff] }
 0x6b1   :  { %2487 = vmatprep.subr.bf16.mxu0 %v2862_v40  ;;  %2519 = vmatprep.subr.bf16.mxu1 %v2868_v46  ;;  %v1844_v40 = vld [vmem:[#allocation6] sm:$0xff] }
 0x6b2   :  { %v2523_v46 = vpack.c.bf16 %v1845_v44, %v1844_v40 }
 0x6b4   :  { %2489 = vmatpush1.bf16.msra.mxu0 %v2871_v50  ;;  %2521 = vmatpush1.bf16.msra.mxu1 %v2875_v52  ;;  %v2701_v50 = vmov 0.0|0.0   ;;  %v1846_v52 = vld [vmem:[#allocation6 + $0x10] sm:$0xff] }
 0x6b5   :  { %2522 = vmatprep.subr.bf16.mxu0 %v2701_v50  ;;  %v2526_v29 = vpack.c.bf16 %v1847_v26, %v1846_v52 }
 0x76a   :  { %v1524_v15 = vpop.f32.mrb[12].mxu0  ;;  %v1595_v19 = vpop.f32.mrb[16].mxu1 }
 0x76b   :  { %v1526_v20 = vpop.f32.mrb[13].mxu0  ;;  %v1597_v24 = vpop.f32.mrb[17].mxu1 }
 0x76c   :  { %v1604_v28 = vcombine.low %v1524_v15, %v1526_v20  ;;  %v1605_v32 = vcombine.low %v1595_v19, %v1597_v24 }
 0x76e   :  { %v1612_v33 = vrot.slane %v1604_v28, %v2921_v30  ;;  %v1619_v37 = vrot.slane %v1605_v32, %v2921_v30 }
 0x770   :  { %v1620_v41 = vcombine.low %v1612_v33, %v1619_v37 }
 0x772   :  { %v1627_v45 = vrot.slane %v1620_v41, %v2921_v30 }
 0x774   :  { %v1629_v51 = vadd.f32 %v1627_v45, %v1457_v48 }
 0x776   :  { %v1956_v54 = vmul.f32 -1.442695, %v1629_v51  ;;  %v1637_v63 = vrot.slane %v1629_v51, 3  ;;  %v1860_v51 = vld [vmem:[%s3194_s5] sm:$0x1] }
 0x778   :  { %2605 = vpow2.f32 %v1956_v54 }
 0x782   :  { %v2606_v57 = vpop.eup %2605 }
 0x783   :  { %v1633_v60 = vadd.f32 1.0, %v2606_v57 }
 0x785   :  { %2607 = vrcp.f32 %v1633_v60 }
 0x786   :  { %2609 = vtanh.f32 %v1637_v63 }
 0x78f   :  { %v2608_v3 = vpop.eup %2607 }
 0x790   :  { %v1641_v6 = vrot.slane %v2608_v3, 1  ;;  %v2610_v9 = vpop.eup %2609  ;;  %v1647_v27 = vrot.slane %v2608_v3, 2 }
 0x791   :  { %v1644_v14 = vmul.f32 %v2610_v9, %v2608_v3 }
 0x792   :  { %v1643_v18 = vmul.f32 %v1641_v6, %v1451_v17 }
 0x794   :  { %v3166_v23 = vadd.f32 %v1644_v14, %v1643_v18 }
 0x796   :  { %2611 = vtanh.f32 %v3166_v23 }
 0x7a0   :  { %v2612_v31 = vpop.eup %2611 }
 0x7a1   :  { %v1649_v36 = vmul.f32 %v2612_v31, %v1647_v27 }
 0x7a3   :  { %1717 = vmatmul.mubr.f32.vlgmr.msra.gmra.mrb[14].mxu0 %v1649_v36  ;;  %1788 = vmatmul.mubr.f32.vlgmr.msra.gmra.mrb[18].mxu1 %v1649_v36 }
 0x7a4   :  { %2524 = vmatpush3.bf16.msra.mxu0 %v2523_v46  ;;  %2007 = vmatprep.mubr.msk.f32.mxu0 %vm2702_vm1, %v2699_v0  ;;  %v2538_v0 = vpack.c.bf16 %v1855_v58, %v1854_v56 }
 0x7a5   :  { %2525 = vmatprep.subr.bf16.mxu0 %v2701_v50 }
 0x7a8   :  { %2527 = vmatpush3.bf16.msra.mxu0 %v2526_v29 }
 0x7a9   :  { %2528 = vmatprep.subr.bf16.mxu0 %v2701_v50 }
 0x7ac   :  { %2530 = vmatpush3.bf16.msra.mxu0 %v2529_v38 }
 0x7ad   :  { %2531 = vmatprep.subr.bf16.mxu0 %v2701_v50 }
 0x7b0   :  { %2533 = vmatpush3.bf16.msra.mxu0 %v2532_v43 }
 0x7b1   :  { %2534 = vmatprep.subr.bf16.mxu0 %v2701_v50 }
 0x7b4   :  { %2536 = vmatpush3.bf16.msra.mxu0 %v2535_v53 }
 0x7b5   :  { %2537 = vmatprep.subr.bf16.mxu0 %v2701_v50 }
 0x7b8   :  { %2539 = vmatpush3.bf16.msra.mxu0 %v2538_v0 }
 0x7b9   :  { %2540 = vmatprep.subr.bf16.mxu0 %v2701_v50 }
 0x7bc   :  { %2542 = vmatpush3.bf16.msra.mxu0 %v2541_v62 }
 0x7bd   :  { %2543 = vmatprep.subr.bf16.mxu0 %v2701_v50 }
 0x7c0   :  { %2545 = vmatpush3.bf16.msra.mxu0 %v2544_v2 }
 0x876   :  { %v1718_v4 = vpop.f32.mrb[14].mxu0  ;;  %v1789_v10 = vpop.f32.mrb[18].mxu1 }
 0x877   :  { %v1720_v5 = vpop.f32.mrb[15].mxu0  ;;  %v1791_v11 = vpop.f32.mrb[19].mxu1 }
 0x878   :  { %v1798_v7 = vcombine.low %v1718_v4, %v1720_v5  ;;  %v1799_v8 = vcombine.low %v1789_v10, %v1791_v11 }
 0x87a   :  { %v1806_v12 = vrot.slane %v1798_v7, %v2921_v30  ;;  %v1813_v13 = vrot.slane %v1799_v8, %v2921_v30 }
 0x87c   :  { %v1814_v16 = vcombine.low %v1806_v12, %v1813_v13 }
 0x87e   :  { %v1821_v17 = vrot.slane %v1814_v16, %v2921_v30 }
 0x880   :  { %v1823_v22 = vadd.f32 %v1821_v17, %v1651_v21 }
 0x882   :  { %v1957_v25 = vmul.f32 -1.442695, %v1823_v22  ;;  %v1831_v20 = vrot.slane %v1823_v22, 3 }
 0x884   :  { %2613 = vpow2.f32 %v1957_v25 }
 0x88e   :  { %v2614_v15 = vpop.eup %2613 }
 0x88f   :  { %v1827_v19 = vadd.f32 1.0, %v2614_v15 }
 0x891   :  { %2615 = vrcp.f32 %v1827_v19 }
 0x892   :  { %2617 = vtanh.f32 %v1831_v20 }
 0x89b   :  { %v2616_v24 = vpop.eup %2615 }
 0x89c   :  { %v1835_v28 = vrot.slane %v2616_v24, 1  ;;  %v2618_v32 = vpop.eup %2617  ;;  %v1841_v45 = vrot.slane %v2616_v24, 2 }
 0x89d   :  { %v1838_v37 = vmul.f32 %v2618_v32, %v2616_v24 }
 0x89e   :  { %v1837_v33 = vmul.f32 %v1835_v28, %v3166_v23 }
 0x8a0   :  { %v1839_v41 = vadd.f32 %v1838_v37, %v1837_v33 }
 0x8a2   :  { %2619 = vtanh.f32 %v1839_v41 }
 0x8ac   :  { %v2620_v48 = vpop.eup %2619 }
 0x8ad   :  { %v1843_v30 = vmul.f32 %v2620_v48, %v1841_v45 }
 0x8af   :  { %2008 = vmatmul.mubr.f32.vlgmr.msra.gmra.mrb[16].mxu0 %v1843_v30 }
 0x982   :  { %v1927_v54 = vpop.f32.mrb[16].mxu0 }
 0x983   :  { %v1928_v57 = vadd.f32 %v1927_v54, %v1860_v51  ;;  %v2009_v60 = vpop.f32.mrb[17].mxu0 }
 0x985   :  { %1931 = vst [vmem:[#allocation8] sm:$0x1] %v1928_v57 }
 0x986   :  { %2676 = shalt.err (!%p2673_p6)
}
 0x987   :  { %s2677_s16 = scalar_lea.hbm %s3195_s6, 16 }
 0x988   :  { %p2678_p7 = scmp.ne.s32.totalorder %s3195_s6, %s2677_s16  ;;  %p2681_p8 = scmp.lt.u32.totalorder %s2677_s16, %s3195_s6 }
 0x98a   :  { %p2683_p9 = pnand %p2681_p8, %p2678_p7 }
 0x98c   :  { %2686 = shalt.err (!%p2683_p9)
}
 0x98d   :  { %1941 = dma.vmem_to_hbm [thread:$0]  %s1939_s11, 16, %s3195_s6, [#allocation5]  }
 0x98e   :  { %2691 = dma.done.wait [#allocation5], 16  }
 0x98f   :  { %2692 = vsyncadd [#allocation5], 4294967280 }
 0x990   :  { %1945 = vsyncpa [#allocation4], 1 }
 0x991   :  { %1946 = vsyncpa [#allocation7], 1 }
 0x992   :  { %1947 = vsyncpa [#allocation5], 1 }

</bundles_post_ra>
